<compile_context>
chip_gen: v7x
topology: tpu7x:2x2x1
jax: 0.10.0
libtpu: 0.0.40
codegen_flags: <defaults>
</compile_context>

<pallas_src>
import functools

import jax
import jax.numpy as jnp
from jax.experimental import pallas as pl
from jax.experimental.pallas import tpu as pltpu


# ----------------------------- Pallas kernel -------------------------------

def _lstm_blue_kernel(x_ref,            # [T*B, I]   time-major, flattened
                      wih0_ref,         # [I, 4H]
                      whh0_ref,         # [H, 4H]
                      b0_ref,           # [1, 4H]    (b_ih + b_hh, layer 0)
                      wih1_ref,         # [H, 4H]
                      whh1_ref,         # [H, 4H]
                      b1_ref,           # [1, 4H]    (b_ih + b_hh, layer 1)
                      wfc_ref,          # [H, C]
                      bfc_ref,          # [1, C]
                      out_ref,          # [B, C]
                      y0_scr,           # [T*B, H]   layer-0 outputs
                      *, hidden_size, batch, seq_len):
    H = hidden_size
    B = batch
    T = seq_len

    def step(gates_in, h_prev, c_prev, whh):
        # gates_in already contains x_t·Wih + b (precomputed, batched).
        gates = gates_in + jnp.dot(h_prev, whh,
                                   preferred_element_type=jnp.float32)
        # One sigmoid + one tanh over the full [B, 4H] (128-lane) vreg,
        # then cheap lane slices per gate.
        sig = jax.nn.sigmoid(gates)
        tnh = jnp.tanh(gates)
        i_g = sig[:, 0 * H:1 * H]
        f_g = sig[:, 1 * H:2 * H]
        g_g = tnh[:, 2 * H:3 * H]
        o_g = sig[:, 3 * H:4 * H]
        c_new = f_g * c_prev + i_g * g_g
        h_new = o_g * jnp.tanh(c_new)
        return h_new, c_new

    # ----- layer 0: batched input projection (one MXU pass for all T steps) -
    proj0 = (jnp.dot(x_ref[...], wih0_ref[...],
                     preferred_element_type=jnp.float32)
             + b0_ref[...])                                  # [T*B, 4H]

    whh0 = whh0_ref[...]
    h = jnp.zeros((B, H), jnp.float32)                       # h0 = 0
    c = jnp.zeros((B, H), jnp.float32)                       # c0 = 0
    for t in range(T):                                       # static unroll
        h, c = step(proj0[t * B:(t + 1) * B, :], h, c, whh0)
        y0_scr[t * B:(t + 1) * B, :] = h                     # stage for layer 1

    # ----- layer 1: batched input projection of layer-0 outputs -------------
    # TODO(synk): inter-layer dropout skipped (eval semantics).
    proj1 = (jnp.dot(y0_scr[...], wih1_ref[...],
                     preferred_element_type=jnp.float32)
             + b1_ref[...])                                  # [T*B, 4H]

    whh1 = whh1_ref[...]
    h = jnp.zeros((B, H), jnp.float32)
    c = jnp.zeros((B, H), jnp.float32)
    for t in range(T):                                       # static unroll
        h, c = step(proj1[t * B:(t + 1) * B, :], h, c, whh1)

    # ----- final FC on the last hidden state of the top layer ---------------
    out_ref[...] = (jnp.dot(h, wfc_ref[...],
                            preferred_element_type=jnp.float32)
                    + bfc_ref[...])


def lstm_blue_forward(x_btI, params, *, hidden_size):
    """x_btI: [B, T, I] float32.  Returns logits [B, num_classes]."""
    B, T, I = x_btI.shape
    H = hidden_size
    C = params["w_fc"].shape[0]

    # time-major, flattened over (T, B) so input projections are one matmul
    x_flat = jnp.transpose(x_btI, (1, 0, 2)).reshape(T * B, I)

    # Pre-transpose weights so the kernel does plain row-major matmuls.
    wih0_t = params["w_ih0"].T                               # [I, 4H]
    whh0_t = params["w_hh0"].T                               # [H, 4H]
    wih1_t = params["w_ih1"].T                               # [H, 4H]
    whh1_t = params["w_hh1"].T                               # [H, 4H]
    b0 = (params["b_ih0"] + params["b_hh0"]).reshape(1, 4 * H)
    b1 = (params["b_ih1"] + params["b_hh1"]).reshape(1, 4 * H)
    wfc_t = params["w_fc"].T                                 # [H, C]
    bfc = params["b_fc"].reshape(1, C)

    kernel = functools.partial(_lstm_blue_kernel,
                               hidden_size=H, batch=B, seq_len=T)
    vmem = pl.BlockSpec(memory_space=pltpu.MemorySpace.VMEM)

    return pl.pallas_call(
        kernel,
        out_shape=jax.ShapeDtypeStruct((B, C), jnp.float32),
        in_specs=[vmem] * 9,
        out_specs=vmem,
        scratch_shapes=[
            pltpu.VMEM((T * B, H), jnp.float32),             # layer-0 outputs
        ],
    )(x_flat, wih0_t, whh0_t, b0, wih1_t, whh1_t, b1, wfc_t, bfc)


# -------------------------- deterministic init -----------------------------

def _xavier_uniform(key, shape):
    fan_out, fan_in = shape
    bound = jnp.sqrt(6.0 / (fan_in + fan_out))
    return jax.random.uniform(key, shape, jnp.float32, -bound, bound)


def _orthogonal(key, shape):
    rows, cols = shape
    n = max(rows, cols)
    a = jax.random.normal(key, (n, min(rows, cols)), jnp.float32)
    q, r = jnp.linalg.qr(a)
    q = q * jnp.sign(jnp.diagonal(r))[None, :]
    if rows < cols:
        q = q.T
    return q[:rows, :cols].astype(jnp.float32)


def make_params(key, input_size, hidden_size, num_classes):
    H = hidden_size
    ks = jax.random.split(key, 6)
    params = {
        # layer 0
        "w_ih0": _xavier_uniform(ks[0], (4 * H, input_size)),
        "w_hh0": _orthogonal(ks[1], (4 * H, H)),
        "b_ih0": jnp.zeros((4 * H,), jnp.float32),
        "b_hh0": jnp.zeros((4 * H,), jnp.float32),
        # layer 1
        "w_ih1": _xavier_uniform(ks[2], (4 * H, H)),
        "w_hh1": _orthogonal(ks[3], (4 * H, H)),
        "b_ih1": jnp.zeros((4 * H,), jnp.float32),
        "b_hh1": jnp.zeros((4 * H,), jnp.float32),
        # fc
        "w_fc": _xavier_uniform(ks[4], (num_classes, H)),
        "b_fc": jnp.zeros((num_classes,), jnp.float32),
    }
    return params


# ----------------------------- pure-JAX reference ---------------------------

def reference_forward(x_btI, params, *, hidden_size):
    H = hidden_size
    B, T, I = x_btI.shape

    def cell(x_t, h, c, wih, whh, b):
        g = x_t @ wih.T + h @ whh.T + b
        i = jax.nn.sigmoid(g[:, 0 * H:1 * H])
        f = jax.nn.sigmoid(g[:, 1 * H:2 * H])
        gg = jnp.tanh(g[:, 2 * H:3 * H])
        o = jax.nn.sigmoid(g[:, 3 * H:4 * H])
        c = f * c + i * gg
        h = o * jnp.tanh(c)
        return h, c

    h0 = jnp.zeros((B, H)); c0 = jnp.zeros((B, H))
    h1 = jnp.zeros((B, H)); c1 = jnp.zeros((B, H))
    b0 = params["b_ih0"] + params["b_hh0"]
    b1 = params["b_ih1"] + params["b_hh1"]
    for t in range(T):
        h0, c0 = cell(x_btI[:, t, :], h0, c0,
                      params["w_ih0"], params["w_hh0"], b0)
        h1, c1 = cell(h0, h1, c1,
                      params["w_ih1"], params["w_hh1"], b1)
    return h1 @ params["w_fc"].T + params["b_fc"]


# --------------------------------- main -------------------------------------

if __name__ == "__main__":
    B, T, INPUT, HIDDEN, CLASSES = 2, 8, 16, 32, 10

    key = jax.random.PRNGKey(0)
    k_x, k_p = jax.random.split(key)
    x = jax.random.normal(k_x, (B, T, INPUT), jnp.float32)
    params = make_params(k_p, INPUT, HIDDEN, CLASSES)

    out = lstm_blue_forward(x, params, hidden_size=HIDDEN)
    out = jax.block_until_ready(out)

    ref = reference_forward(x, params, hidden_size=HIDDEN)
    assert out.shape == (B, CLASSES)
    assert jnp.allclose(out, ref, atol=1e-5, rtol=1e-5), (out, ref)

    print("KERNEL_OK")
</pallas_src>

<mosaic_0001>
module attributes {stable_mosaic.version = 11 : i64} {
  func.func @_lstm_blue_kernel(%arg0: memref<16x16xf32, #tpu.memory_space<vmem>>, %arg1: memref<16x128xf32, #tpu.memory_space<vmem>>, %arg2: memref<32x128xf32, #tpu.memory_space<vmem>>, %arg3: memref<1x128xf32, #tpu.memory_space<vmem>>, %arg4: memref<32x128xf32, #tpu.memory_space<vmem>>, %arg5: memref<32x128xf32, #tpu.memory_space<vmem>>, %arg6: memref<1x128xf32, #tpu.memory_space<vmem>>, %arg7: memref<32x10xf32, #tpu.memory_space<vmem>>, %arg8: memref<1x10xf32, #tpu.memory_space<vmem>>, %arg9: memref<2x10xf32, #tpu.memory_space<vmem>>, %arg10: memref<16x32xf32, #tpu.memory_space<vmem>>) attributes {dimension_semantics = [], scalar_prefetch = 0 : i64, scratch_operands = 1 : i64, tpu.core_type = #tpu.core_type<tc>} {
    %c0 = arith.constant 0 : index
    %c0_0 = arith.constant 0 : index
    %0 = vector.load %arg0[%c0, %c0_0] : memref<16x16xf32, #tpu.memory_space<vmem>>, vector<16x16xf32>
    %c0_1 = arith.constant 0 : index
    %c0_2 = arith.constant 0 : index
    %1 = vector.load %arg1[%c0_1, %c0_2] : memref<16x128xf32, #tpu.memory_space<vmem>>, vector<16x128xf32>
    %cst = arith.constant dense<0.000000e+00> : vector<16x128xf32>
    %2 = tpu.matmul %0, %1, %cst {dimension_numbers = #tpu.dot_dimension_numbers<[1], [0], [0], [1], [0, 0, 1, 1], [], []>} : vector<16x16xf32>, vector<16x128xf32>, vector<16x128xf32> -> vector<16x128xf32>
    %c0_3 = arith.constant 0 : index
    %c0_4 = arith.constant 0 : index
    %3 = vector.load %arg3[%c0_3, %c0_4] : memref<1x128xf32, #tpu.memory_space<vmem>>, vector<1x128xf32>
    %4 = vector.broadcast %3 : vector<1x128xf32> to vector<16x128xf32>
    %5 = arith.addf %2, %4 : vector<16x128xf32>
    %c0_5 = arith.constant 0 : index
    %c0_6 = arith.constant 0 : index
    %6 = vector.load %arg2[%c0_5, %c0_6] : memref<32x128xf32, #tpu.memory_space<vmem>>, vector<32x128xf32>
    %cst_7 = arith.constant 0.000000e+00 : f32
    %7 = vector.broadcast %cst_7 : f32 to vector<2x32xf32>
    %cst_8 = arith.constant 0.000000e+00 : f32
    %8 = vector.broadcast %cst_8 : f32 to vector<2x32xf32>
    %9 = vector.extract_strided_slice %5 {offsets = [0, 0], sizes = [2, 128], strides = [1, 1]} : vector<16x128xf32> to vector<2x128xf32>
    %cst_9 = arith.constant dense<0.000000e+00> : vector<2x128xf32>
    %10 = tpu.matmul %7, %6, %cst_9 {dimension_numbers = #tpu.dot_dimension_numbers<[1], [0], [0], [1], [0, 0, 1, 1], [], []>} : vector<2x32xf32>, vector<32x128xf32>, vector<2x128xf32> -> vector<2x128xf32>
    %11 = arith.addf %9, %10 : vector<2x128xf32>
    %12 = arith.negf %11 : vector<2x128xf32>
    %13 = math.exp %12 : vector<2x128xf32>
    %cst_10 = arith.constant 1.000000e+00 : f32
    %14 = vector.broadcast %cst_10 : f32 to vector<2x128xf32>
    %15 = arith.addf %14, %13 : vector<2x128xf32>
    %16 = arith.divf %14, %15 : vector<2x128xf32>
    %17 = math.tanh %11 : vector<2x128xf32>
    %18 = vector.extract_strided_slice %16 {offsets = [0, 0], sizes = [2, 32], strides = [1, 1]} : vector<2x128xf32> to vector<2x32xf32>
    %19 = vector.extract_strided_slice %16 {offsets = [0, 32], sizes = [2, 32], strides = [1, 1]} : vector<2x128xf32> to vector<2x32xf32>
    %20 = vector.extract_strided_slice %17 {offsets = [0, 64], sizes = [2, 32], strides = [1, 1]} : vector<2x128xf32> to vector<2x32xf32>
    %21 = vector.extract_strided_slice %16 {offsets = [0, 96], sizes = [2, 32], strides = [1, 1]} : vector<2x128xf32> to vector<2x32xf32>
    %22 = arith.mulf %19, %8 : vector<2x32xf32>
    %23 = arith.mulf %18, %20 : vector<2x32xf32>
    %24 = arith.addf %22, %23 : vector<2x32xf32>
    %25 = math.tanh %24 : vector<2x32xf32>
    %26 = arith.mulf %21, %25 : vector<2x32xf32>
    %c0_11 = arith.constant 0 : index
    %c0_12 = arith.constant 0 : index
    %27 = vector.load %arg10[%c0_11, %c0_12] : memref<16x32xf32, #tpu.memory_space<vmem>>, vector<2x32xf32>
    tpu.vector_store %arg10[%c0_11, %c0_12], %26 {strides = array<i32>} : memref<16x32xf32, #tpu.memory_space<vmem>>, vector<2x32xf32>,
    %28 = vector.extract_strided_slice %5 {offsets = [2, 0], sizes = [2, 128], strides = [1, 1]} : vector<16x128xf32> to vector<2x128xf32>
    %cst_13 = arith.constant dense<0.000000e+00> : vector<2x128xf32>
    %29 = tpu.matmul %26, %6, %cst_13 {dimension_numbers = #tpu.dot_dimension_numbers<[1], [0], [0], [1], [0, 0, 1, 1], [], []>} : vector<2x32xf32>, vector<32x128xf32>, vector<2x128xf32> -> vector<2x128xf32>
    %30 = arith.addf %28, %29 : vector<2x128xf32>
    %31 = arith.negf %30 : vector<2x128xf32>
    %32 = math.exp %31 : vector<2x128xf32>
    %cst_14 = arith.constant 1.000000e+00 : f32
    %33 = vector.broadcast %cst_14 : f32 to vector<2x128xf32>
    %34 = arith.addf %33, %32 : vector<2x128xf32>
    %35 = arith.divf %33, %34 : vector<2x128xf32>
    %36 = math.tanh %30 : vector<2x128xf32>
    %37 = vector.extract_strided_slice %35 {offsets = [0, 0], sizes = [2, 32], strides = [1, 1]} : vector<2x128xf32> to vector<2x32xf32>
    %38 = vector.extract_strided_slice %35 {offsets = [0, 32], sizes = [2, 32], strides = [1, 1]} : vector<2x128xf32> to vector<2x32xf32>
    %39 = vector.extract_strided_slice %36 {offsets = [0, 64], sizes = [2, 32], strides = [1, 1]} : vector<2x128xf32> to vector<2x32xf32>
    %40 = vector.extract_strided_slice %35 {offsets = [0, 96], sizes = [2, 32], strides = [1, 1]} : vector<2x128xf32> to vector<2x32xf32>
    %41 = arith.mulf %38, %24 : vector<2x32xf32>
    %42 = arith.mulf %37, %39 : vector<2x32xf32>
    %43 = arith.addf %41, %42 : vector<2x32xf32>
    %44 = math.tanh %43 : vector<2x32xf32>
    %45 = arith.mulf %40, %44 : vector<2x32xf32>
    %c2 = arith.constant 2 : index
    %c0_15 = arith.constant 0 : index
    %46 = vector.load %arg10[%c2, %c0_15] : memref<16x32xf32, #tpu.memory_space<vmem>>, vector<2x32xf32>
    tpu.vector_store %arg10[%c2, %c0_15], %45 {strides = array<i32>} : memref<16x32xf32, #tpu.memory_space<vmem>>, vector<2x32xf32>,
    %47 = vector.extract_strided_slice %5 {offsets = [4, 0], sizes = [2, 128], strides = [1, 1]} : vector<16x128xf32> to vector<2x128xf32>
    %cst_16 = arith.constant dense<0.000000e+00> : vector<2x128xf32>
    %48 = tpu.matmul %45, %6, %cst_16 {dimension_numbers = #tpu.dot_dimension_numbers<[1], [0], [0], [1], [0, 0, 1, 1], [], []>} : vector<2x32xf32>, vector<32x128xf32>, vector<2x128xf32> -> vector<2x128xf32>
    %49 = arith.addf %47, %48 : vector<2x128xf32>
    %50 = arith.negf %49 : vector<2x128xf32>
    %51 = math.exp %50 : vector<2x128xf32>
    %cst_17 = arith.constant 1.000000e+00 : f32
    %52 = vector.broadcast %cst_17 : f32 to vector<2x128xf32>
    %53 = arith.addf %52, %51 : vector<2x128xf32>
    %54 = arith.divf %52, %53 : vector<2x128xf32>
    %55 = math.tanh %49 : vector<2x128xf32>
    %56 = vector.extract_strided_slice %54 {offsets = [0, 0], sizes = [2, 32], strides = [1, 1]} : vector<2x128xf32> to vector<2x32xf32>
    %57 = vector.extract_strided_slice %54 {offsets = [0, 32], sizes = [2, 32], strides = [1, 1]} : vector<2x128xf32> to vector<2x32xf32>
    %58 = vector.extract_strided_slice %55 {offsets = [0, 64], sizes = [2, 32], strides = [1, 1]} : vector<2x128xf32> to vector<2x32xf32>
    %59 = vector.extract_strided_slice %54 {offsets = [0, 96], sizes = [2, 32], strides = [1, 1]} : vector<2x128xf32> to vector<2x32xf32>
    %60 = arith.mulf %57, %43 : vector<2x32xf32>
    %61 = arith.mulf %56, %58 : vector<2x32xf32>
    %62 = arith.addf %60, %61 : vector<2x32xf32>
    %63 = math.tanh %62 : vector<2x32xf32>
    %64 = arith.mulf %59, %63 : vector<2x32xf32>
    %c4 = arith.constant 4 : index
    %c0_18 = arith.constant 0 : index
    %65 = vector.load %arg10[%c4, %c0_18] : memref<16x32xf32, #tpu.memory_space<vmem>>, vector<2x32xf32>
    tpu.vector_store %arg10[%c4, %c0_18], %64 {strides = array<i32>} : memref<16x32xf32, #tpu.memory_space<vmem>>, vector<2x32xf32>,
    %66 = vector.extract_strided_slice %5 {offsets = [6, 0], sizes = [2, 128], strides = [1, 1]} : vector<16x128xf32> to vector<2x128xf32>
    %cst_19 = arith.constant dense<0.000000e+00> : vector<2x128xf32>
    %67 = tpu.matmul %64, %6, %cst_19 {dimension_numbers = #tpu.dot_dimension_numbers<[1], [0], [0], [1], [0, 0, 1, 1], [], []>} : vector<2x32xf32>, vector<32x128xf32>, vector<2x128xf32> -> vector<2x128xf32>
    %68 = arith.addf %66, %67 : vector<2x128xf32>
    %69 = arith.negf %68 : vector<2x128xf32>
    %70 = math.exp %69 : vector<2x128xf32>
    %cst_20 = arith.constant 1.000000e+00 : f32
    %71 = vector.broadcast %cst_20 : f32 to vector<2x128xf32>
    %72 = arith.addf %71, %70 : vector<2x128xf32>
    %73 = arith.divf %71, %72 : vector<2x128xf32>
    %74 = math.tanh %68 : vector<2x128xf32>
    %75 = vector.extract_strided_slice %73 {offsets = [0, 0], sizes = [2, 32], strides = [1, 1]} : vector<2x128xf32> to vector<2x32xf32>
    %76 = vector.extract_strided_slice %73 {offsets = [0, 32], sizes = [2, 32], strides = [1, 1]} : vector<2x128xf32> to vector<2x32xf32>
    %77 = vector.extract_strided_slice %74 {offsets = [0, 64], sizes = [2, 32], strides = [1, 1]} : vector<2x128xf32> to vector<2x32xf32>
    %78 = vector.extract_strided_slice %73 {offsets = [0, 96], sizes = [2, 32], strides = [1, 1]} : vector<2x128xf32> to vector<2x32xf32>
    %79 = arith.mulf %76, %62 : vector<2x32xf32>
    %80 = arith.mulf %75, %77 : vector<2x32xf32>
    %81 = arith.addf %79, %80 : vector<2x32xf32>
    %82 = math.tanh %81 : vector<2x32xf32>
    %83 = arith.mulf %78, %82 : vector<2x32xf32>
    %c6 = arith.constant 6 : index
    %c0_21 = arith.constant 0 : index
    %84 = vector.load %arg10[%c6, %c0_21] : memref<16x32xf32, #tpu.memory_space<vmem>>, vector<2x32xf32>
    tpu.vector_store %arg10[%c6, %c0_21], %83 {strides = array<i32>} : memref<16x32xf32, #tpu.memory_space<vmem>>, vector<2x32xf32>,
    %85 = vector.extract_strided_slice %5 {offsets = [8, 0], sizes = [2, 128], strides = [1, 1]} : vector<16x128xf32> to vector<2x128xf32>
    %cst_22 = arith.constant dense<0.000000e+00> : vector<2x128xf32>
    %86 = tpu.matmul %83, %6, %cst_22 {dimension_numbers = #tpu.dot_dimension_numbers<[1], [0], [0], [1], [0, 0, 1, 1], [], []>} : vector<2x32xf32>, vector<32x128xf32>, vector<2x128xf32> -> vector<2x128xf32>
    %87 = arith.addf %85, %86 : vector<2x128xf32>
    %88 = arith.negf %87 : vector<2x128xf32>
    %89 = math.exp %88 : vector<2x128xf32>
    %cst_23 = arith.constant 1.000000e+00 : f32
    %90 = vector.broadcast %cst_23 : f32 to vector<2x128xf32>
    %91 = arith.addf %90, %89 : vector<2x128xf32>
    %92 = arith.divf %90, %91 : vector<2x128xf32>
    %93 = math.tanh %87 : vector<2x128xf32>
    %94 = vector.extract_strided_slice %92 {offsets = [0, 0], sizes = [2, 32], strides = [1, 1]} : vector<2x128xf32> to vector<2x32xf32>
    %95 = vector.extract_strided_slice %92 {offsets = [0, 32], sizes = [2, 32], strides = [1, 1]} : vector<2x128xf32> to vector<2x32xf32>
    %96 = vector.extract_strided_slice %93 {offsets = [0, 64], sizes = [2, 32], strides = [1, 1]} : vector<2x128xf32> to vector<2x32xf32>
    %97 = vector.extract_strided_slice %92 {offsets = [0, 96], sizes = [2, 32], strides = [1, 1]} : vector<2x128xf32> to vector<2x32xf32>
    %98 = arith.mulf %95, %81 : vector<2x32xf32>
    %99 = arith.mulf %94, %96 : vector<2x32xf32>
    %100 = arith.addf %98, %99 : vector<2x32xf32>
    %101 = math.tanh %100 : vector<2x32xf32>
    %102 = arith.mulf %97, %101 : vector<2x32xf32>
    %c8 = arith.constant 8 : index
    %c0_24 = arith.constant 0 : index
    %103 = vector.load %arg10[%c8, %c0_24] : memref<16x32xf32, #tpu.memory_space<vmem>>, vector<2x32xf32>
    tpu.vector_store %arg10[%c8, %c0_24], %102 {strides = array<i32>} : memref<16x32xf32, #tpu.memory_space<vmem>>, vector<2x32xf32>,
    %104 = vector.extract_strided_slice %5 {offsets = [10, 0], sizes = [2, 128], strides = [1, 1]} : vector<16x128xf32> to vector<2x128xf32>
    %cst_25 = arith.constant dense<0.000000e+00> : vector<2x128xf32>
    %105 = tpu.matmul %102, %6, %cst_25 {dimension_numbers = #tpu.dot_dimension_numbers<[1], [0], [0], [1], [0, 0, 1, 1], [], []>} : vector<2x32xf32>, vector<32x128xf32>, vector<2x128xf32> -> vector<2x128xf32>
    %106 = arith.addf %104, %105 : vector<2x128xf32>
    %107 = arith.negf %106 : vector<2x128xf32>
    %108 = math.exp %107 : vector<2x128xf32>
    %cst_26 = arith.constant 1.000000e+00 : f32
    %109 = vector.broadcast %cst_26 : f32 to vector<2x128xf32>
    %110 = arith.addf %109, %108 : vector<2x128xf32>
    %111 = arith.divf %109, %110 : vector<2x128xf32>
    %112 = math.tanh %106 : vector<2x128xf32>
    %113 = vector.extract_strided_slice %111 {offsets = [0, 0], sizes = [2, 32], strides = [1, 1]} : vector<2x128xf32> to vector<2x32xf32>
    %114 = vector.extract_strided_slice %111 {offsets = [0, 32], sizes = [2, 32], strides = [1, 1]} : vector<2x128xf32> to vector<2x32xf32>
    %115 = vector.extract_strided_slice %112 {offsets = [0, 64], sizes = [2, 32], strides = [1, 1]} : vector<2x128xf32> to vector<2x32xf32>
    %116 = vector.extract_strided_slice %111 {offsets = [0, 96], sizes = [2, 32], strides = [1, 1]} : vector<2x128xf32> to vector<2x32xf32>
    %117 = arith.mulf %114, %100 : vector<2x32xf32>
    %118 = arith.mulf %113, %115 : vector<2x32xf32>
    %119 = arith.addf %117, %118 : vector<2x32xf32>
    %120 = math.tanh %119 : vector<2x32xf32>
    %121 = arith.mulf %116, %120 : vector<2x32xf32>
    %c10 = arith.constant 10 : index
    %c0_27 = arith.constant 0 : index
    %122 = vector.load %arg10[%c10, %c0_27] : memref<16x32xf32, #tpu.memory_space<vmem>>, vector<2x32xf32>
    tpu.vector_store %arg10[%c10, %c0_27], %121 {strides = array<i32>} : memref<16x32xf32, #tpu.memory_space<vmem>>, vector<2x32xf32>,
    %123 = vector.extract_strided_slice %5 {offsets = [12, 0], sizes = [2, 128], strides = [1, 1]} : vector<16x128xf32> to vector<2x128xf32>
    %cst_28 = arith.constant dense<0.000000e+00> : vector<2x128xf32>
    %124 = tpu.matmul %121, %6, %cst_28 {dimension_numbers = #tpu.dot_dimension_numbers<[1], [0], [0], [1], [0, 0, 1, 1], [], []>} : vector<2x32xf32>, vector<32x128xf32>, vector<2x128xf32> -> vector<2x128xf32>
    %125 = arith.addf %123, %124 : vector<2x128xf32>
    %126 = arith.negf %125 : vector<2x128xf32>
    %127 = math.exp %126 : vector<2x128xf32>
    %cst_29 = arith.constant 1.000000e+00 : f32
    %128 = vector.broadcast %cst_29 : f32 to vector<2x128xf32>
    %129 = arith.addf %128, %127 : vector<2x128xf32>
    %130 = arith.divf %128, %129 : vector<2x128xf32>
    %131 = math.tanh %125 : vector<2x128xf32>
    %132 = vector.extract_strided_slice %130 {offsets = [0, 0], sizes = [2, 32], strides = [1, 1]} : vector<2x128xf32> to vector<2x32xf32>
    %133 = vector.extract_strided_slice %130 {offsets = [0, 32], sizes = [2, 32], strides = [1, 1]} : vector<2x128xf32> to vector<2x32xf32>
    %134 = vector.extract_strided_slice %131 {offsets = [0, 64], sizes = [2, 32], strides = [1, 1]} : vector<2x128xf32> to vector<2x32xf32>
    %135 = vector.extract_strided_slice %130 {offsets = [0, 96], sizes = [2, 32], strides = [1, 1]} : vector<2x128xf32> to vector<2x32xf32>
    %136 = arith.mulf %133, %119 : vector<2x32xf32>
    %137 = arith.mulf %132, %134 : vector<2x32xf32>
    %138 = arith.addf %136, %137 : vector<2x32xf32>
    %139 = math.tanh %138 : vector<2x32xf32>
    %140 = arith.mulf %135, %139 : vector<2x32xf32>
    %c12 = arith.constant 12 : index
    %c0_30 = arith.constant 0 : index
    %141 = vector.load %arg10[%c12, %c0_30] : memref<16x32xf32, #tpu.memory_space<vmem>>, vector<2x32xf32>
    tpu.vector_store %arg10[%c12, %c0_30], %140 {strides = array<i32>} : memref<16x32xf32, #tpu.memory_space<vmem>>, vector<2x32xf32>,
    %142 = vector.extract_strided_slice %5 {offsets = [14, 0], sizes = [2, 128], strides = [1, 1]} : vector<16x128xf32> to vector<2x128xf32>
    %cst_31 = arith.constant dense<0.000000e+00> : vector<2x128xf32>
    %143 = tpu.matmul %140, %6, %cst_31 {dimension_numbers = #tpu.dot_dimension_numbers<[1], [0], [0], [1], [0, 0, 1, 1], [], []>} : vector<2x32xf32>, vector<32x128xf32>, vector<2x128xf32> -> vector<2x128xf32>
    %144 = arith.addf %142, %143 : vector<2x128xf32>
    %145 = arith.negf %144 : vector<2x128xf32>
    %146 = math.exp %145 : vector<2x128xf32>
    %cst_32 = arith.constant 1.000000e+00 : f32
    %147 = vector.broadcast %cst_32 : f32 to vector<2x128xf32>
    %148 = arith.addf %147, %146 : vector<2x128xf32>
    %149 = arith.divf %147, %148 : vector<2x128xf32>
    %150 = math.tanh %144 : vector<2x128xf32>
    %151 = vector.extract_strided_slice %149 {offsets = [0, 0], sizes = [2, 32], strides = [1, 1]} : vector<2x128xf32> to vector<2x32xf32>
    %152 = vector.extract_strided_slice %149 {offsets = [0, 32], sizes = [2, 32], strides = [1, 1]} : vector<2x128xf32> to vector<2x32xf32>
    %153 = vector.extract_strided_slice %150 {offsets = [0, 64], sizes = [2, 32], strides = [1, 1]} : vector<2x128xf32> to vector<2x32xf32>
    %154 = vector.extract_strided_slice %149 {offsets = [0, 96], sizes = [2, 32], strides = [1, 1]} : vector<2x128xf32> to vector<2x32xf32>
    %155 = arith.mulf %152, %138 : vector<2x32xf32>
    %156 = arith.mulf %151, %153 : vector<2x32xf32>
    %157 = arith.addf %155, %156 : vector<2x32xf32>
    %158 = math.tanh %157 : vector<2x32xf32>
    %159 = arith.mulf %154, %158 : vector<2x32xf32>
    %c14 = arith.constant 14 : index
    %c0_33 = arith.constant 0 : index
    %160 = vector.load %arg10[%c14, %c0_33] : memref<16x32xf32, #tpu.memory_space<vmem>>, vector<2x32xf32>
    tpu.vector_store %arg10[%c14, %c0_33], %159 {strides = array<i32>} : memref<16x32xf32, #tpu.memory_space<vmem>>, vector<2x32xf32>,
    %c0_34 = arith.constant 0 : index
    %c0_35 = arith.constant 0 : index
    %161 = vector.load %arg10[%c0_34, %c0_35] : memref<16x32xf32, #tpu.memory_space<vmem>>, vector<16x32xf32>
    %c0_36 = arith.constant 0 : index
    %c0_37 = arith.constant 0 : index
    %162 = vector.load %arg4[%c0_36, %c0_37] : memref<32x128xf32, #tpu.memory_space<vmem>>, vector<32x128xf32>
    %cst_38 = arith.constant dense<0.000000e+00> : vector<16x128xf32>
    %163 = tpu.matmul %161, %162, %cst_38 {dimension_numbers = #tpu.dot_dimension_numbers<[1], [0], [0], [1], [0, 0, 1, 1], [], []>} : vector<16x32xf32>, vector<32x128xf32>, vector<16x128xf32> -> vector<16x128xf32>
    %c0_39 = arith.constant 0 : index
    %c0_40 = arith.constant 0 : index
    %164 = vector.load %arg6[%c0_39, %c0_40] : memref<1x128xf32, #tpu.memory_space<vmem>>, vector<1x128xf32>
    %165 = vector.broadcast %164 : vector<1x128xf32> to vector<16x128xf32>
    %166 = arith.addf %163, %165 : vector<16x128xf32>
    %c0_41 = arith.constant 0 : index
    %c0_42 = arith.constant 0 : index
    %167 = vector.load %arg5[%c0_41, %c0_42] : memref<32x128xf32, #tpu.memory_space<vmem>>, vector<32x128xf32>
    %cst_43 = arith.constant 0.000000e+00 : f32
    %168 = vector.broadcast %cst_43 : f32 to vector<2x32xf32>
    %cst_44 = arith.constant 0.000000e+00 : f32
    %169 = vector.broadcast %cst_44 : f32 to vector<2x32xf32>
    %170 = vector.extract_strided_slice %166 {offsets = [0, 0], sizes = [2, 128], strides = [1, 1]} : vector<16x128xf32> to vector<2x128xf32>
    %cst_45 = arith.constant dense<0.000000e+00> : vector<2x128xf32>
    %171 = tpu.matmul %168, %167, %cst_45 {dimension_numbers = #tpu.dot_dimension_numbers<[1], [0], [0], [1], [0, 0, 1, 1], [], []>} : vector<2x32xf32>, vector<32x128xf32>, vector<2x128xf32> -> vector<2x128xf32>
    %172 = arith.addf %170, %171 : vector<2x128xf32>
    %173 = arith.negf %172 : vector<2x128xf32>
    %174 = math.exp %173 : vector<2x128xf32>
    %cst_46 = arith.constant 1.000000e+00 : f32
    %175 = vector.broadcast %cst_46 : f32 to vector<2x128xf32>
    %176 = arith.addf %175, %174 : vector<2x128xf32>
    %177 = arith.divf %175, %176 : vector<2x128xf32>
    %178 = math.tanh %172 : vector<2x128xf32>
    %179 = vector.extract_strided_slice %177 {offsets = [0, 0], sizes = [2, 32], strides = [1, 1]} : vector<2x128xf32> to vector<2x32xf32>
    %180 = vector.extract_strided_slice %177 {offsets = [0, 32], sizes = [2, 32], strides = [1, 1]} : vector<2x128xf32> to vector<2x32xf32>
    %181 = vector.extract_strided_slice %178 {offsets = [0, 64], sizes = [2, 32], strides = [1, 1]} : vector<2x128xf32> to vector<2x32xf32>
    %182 = vector.extract_strided_slice %177 {offsets = [0, 96], sizes = [2, 32], strides = [1, 1]} : vector<2x128xf32> to vector<2x32xf32>
    %183 = arith.mulf %180, %169 : vector<2x32xf32>
    %184 = arith.mulf %179, %181 : vector<2x32xf32>
    %185 = arith.addf %183, %184 : vector<2x32xf32>
    %186 = math.tanh %185 : vector<2x32xf32>
    %187 = arith.mulf %182, %186 : vector<2x32xf32>
    %188 = vector.extract_strided_slice %166 {offsets = [2, 0], sizes = [2, 128], strides = [1, 1]} : vector<16x128xf32> to vector<2x128xf32>
    %cst_47 = arith.constant dense<0.000000e+00> : vector<2x128xf32>
    %189 = tpu.matmul %187, %167, %cst_47 {dimension_numbers = #tpu.dot_dimension_numbers<[1], [0], [0], [1], [0, 0, 1, 1], [], []>} : vector<2x32xf32>, vector<32x128xf32>, vector<2x128xf32> -> vector<2x128xf32>
    %190 = arith.addf %188, %189 : vector<2x128xf32>
    %191 = arith.negf %190 : vector<2x128xf32>
    %192 = math.exp %191 : vector<2x128xf32>
    %cst_48 = arith.constant 1.000000e+00 : f32
    %193 = vector.broadcast %cst_48 : f32 to vector<2x128xf32>
    %194 = arith.addf %193, %192 : vector<2x128xf32>
    %195 = arith.divf %193, %194 : vector<2x128xf32>
    %196 = math.tanh %190 : vector<2x128xf32>
    %197 = vector.extract_strided_slice %195 {offsets = [0, 0], sizes = [2, 32], strides = [1, 1]} : vector<2x128xf32> to vector<2x32xf32>
    %198 = vector.extract_strided_slice %195 {offsets = [0, 32], sizes = [2, 32], strides = [1, 1]} : vector<2x128xf32> to vector<2x32xf32>
    %199 = vector.extract_strided_slice %196 {offsets = [0, 64], sizes = [2, 32], strides = [1, 1]} : vector<2x128xf32> to vector<2x32xf32>
    %200 = vector.extract_strided_slice %195 {offsets = [0, 96], sizes = [2, 32], strides = [1, 1]} : vector<2x128xf32> to vector<2x32xf32>
    %201 = arith.mulf %198, %185 : vector<2x32xf32>
    %202 = arith.mulf %197, %199 : vector<2x32xf32>
    %203 = arith.addf %201, %202 : vector<2x32xf32>
    %204 = math.tanh %203 : vector<2x32xf32>
    %205 = arith.mulf %200, %204 : vector<2x32xf32>
    %206 = vector.extract_strided_slice %166 {offsets = [4, 0], sizes = [2, 128], strides = [1, 1]} : vector<16x128xf32> to vector<2x128xf32>
    %cst_49 = arith.constant dense<0.000000e+00> : vector<2x128xf32>
    %207 = tpu.matmul %205, %167, %cst_49 {dimension_numbers = #tpu.dot_dimension_numbers<[1], [0], [0], [1], [0, 0, 1, 1], [], []>} : vector<2x32xf32>, vector<32x128xf32>, vector<2x128xf32> -> vector<2x128xf32>
    %208 = arith.addf %206, %207 : vector<2x128xf32>
    %209 = arith.negf %208 : vector<2x128xf32>
    %210 = math.exp %209 : vector<2x128xf32>
    %cst_50 = arith.constant 1.000000e+00 : f32
    %211 = vector.broadcast %cst_50 : f32 to vector<2x128xf32>
    %212 = arith.addf %211, %210 : vector<2x128xf32>
    %213 = arith.divf %211, %212 : vector<2x128xf32>
    %214 = math.tanh %208 : vector<2x128xf32>
    %215 = vector.extract_strided_slice %213 {offsets = [0, 0], sizes = [2, 32], strides = [1, 1]} : vector<2x128xf32> to vector<2x32xf32>
    %216 = vector.extract_strided_slice %213 {offsets = [0, 32], sizes = [2, 32], strides = [1, 1]} : vector<2x128xf32> to vector<2x32xf32>
    %217 = vector.extract_strided_slice %214 {offsets = [0, 64], sizes = [2, 32], strides = [1, 1]} : vector<2x128xf32> to vector<2x32xf32>
    %218 = vector.extract_strided_slice %213 {offsets = [0, 96], sizes = [2, 32], strides = [1, 1]} : vector<2x128xf32> to vector<2x32xf32>
    %219 = arith.mulf %216, %203 : vector<2x32xf32>
    %220 = arith.mulf %215, %217 : vector<2x32xf32>
    %221 = arith.addf %219, %220 : vector<2x32xf32>
    %222 = math.tanh %221 : vector<2x32xf32>
    %223 = arith.mulf %218, %222 : vector<2x32xf32>
    %224 = vector.extract_strided_slice %166 {offsets = [6, 0], sizes = [2, 128], strides = [1, 1]} : vector<16x128xf32> to vector<2x128xf32>
    %cst_51 = arith.constant dense<0.000000e+00> : vector<2x128xf32>
    %225 = tpu.matmul %223, %167, %cst_51 {dimension_numbers = #tpu.dot_dimension_numbers<[1], [0], [0], [1], [0, 0, 1, 1], [], []>} : vector<2x32xf32>, vector<32x128xf32>, vector<2x128xf32> -> vector<2x128xf32>
    %226 = arith.addf %224, %225 : vector<2x128xf32>
    %227 = arith.negf %226 : vector<2x128xf32>
    %228 = math.exp %227 : vector<2x128xf32>
    %cst_52 = arith.constant 1.000000e+00 : f32
    %229 = vector.broadcast %cst_52 : f32 to vector<2x128xf32>
    %230 = arith.addf %229, %228 : vector<2x128xf32>
    %231 = arith.divf %229, %230 : vector<2x128xf32>
    %232 = math.tanh %226 : vector<2x128xf32>
    %233 = vector.extract_strided_slice %231 {offsets = [0, 0], sizes = [2, 32], strides = [1, 1]} : vector<2x128xf32> to vector<2x32xf32>
    %234 = vector.extract_strided_slice %231 {offsets = [0, 32], sizes = [2, 32], strides = [1, 1]} : vector<2x128xf32> to vector<2x32xf32>
    %235 = vector.extract_strided_slice %232 {offsets = [0, 64], sizes = [2, 32], strides = [1, 1]} : vector<2x128xf32> to vector<2x32xf32>
    %236 = vector.extract_strided_slice %231 {offsets = [0, 96], sizes = [2, 32], strides = [1, 1]} : vector<2x128xf32> to vector<2x32xf32>
    %237 = arith.mulf %234, %221 : vector<2x32xf32>
    %238 = arith.mulf %233, %235 : vector<2x32xf32>
    %239 = arith.addf %237, %238 : vector<2x32xf32>
    %240 = math.tanh %239 : vector<2x32xf32>
    %241 = arith.mulf %236, %240 : vector<2x32xf32>
    %242 = vector.extract_strided_slice %166 {offsets = [8, 0], sizes = [2, 128], strides = [1, 1]} : vector<16x128xf32> to vector<2x128xf32>
    %cst_53 = arith.constant dense<0.000000e+00> : vector<2x128xf32>
    %243 = tpu.matmul %241, %167, %cst_53 {dimension_numbers = #tpu.dot_dimension_numbers<[1], [0], [0], [1], [0, 0, 1, 1], [], []>} : vector<2x32xf32>, vector<32x128xf32>, vector<2x128xf32> -> vector<2x128xf32>
    %244 = arith.addf %242, %243 : vector<2x128xf32>
    %245 = arith.negf %244 : vector<2x128xf32>
    %246 = math.exp %245 : vector<2x128xf32>
    %cst_54 = arith.constant 1.000000e+00 : f32
    %247 = vector.broadcast %cst_54 : f32 to vector<2x128xf32>
    %248 = arith.addf %247, %246 : vector<2x128xf32>
    %249 = arith.divf %247, %248 : vector<2x128xf32>
    %250 = math.tanh %244 : vector<2x128xf32>
    %251 = vector.extract_strided_slice %249 {offsets = [0, 0], sizes = [2, 32], strides = [1, 1]} : vector<2x128xf32> to vector<2x32xf32>
    %252 = vector.extract_strided_slice %249 {offsets = [0, 32], sizes = [2, 32], strides = [1, 1]} : vector<2x128xf32> to vector<2x32xf32>
    %253 = vector.extract_strided_slice %250 {offsets = [0, 64], sizes = [2, 32], strides = [1, 1]} : vector<2x128xf32> to vector<2x32xf32>
    %254 = vector.extract_strided_slice %249 {offsets = [0, 96], sizes = [2, 32], strides = [1, 1]} : vector<2x128xf32> to vector<2x32xf32>
    %255 = arith.mulf %252, %239 : vector<2x32xf32>
    %256 = arith.mulf %251, %253 : vector<2x32xf32>
    %257 = arith.addf %255, %256 : vector<2x32xf32>
    %258 = math.tanh %257 : vector<2x32xf32>
    %259 = arith.mulf %254, %258 : vector<2x32xf32>
    %260 = vector.extract_strided_slice %166 {offsets = [10, 0], sizes = [2, 128], strides = [1, 1]} : vector<16x128xf32> to vector<2x128xf32>
    %cst_55 = arith.constant dense<0.000000e+00> : vector<2x128xf32>
    %261 = tpu.matmul %259, %167, %cst_55 {dimension_numbers = #tpu.dot_dimension_numbers<[1], [0], [0], [1], [0, 0, 1, 1], [], []>} : vector<2x32xf32>, vector<32x128xf32>, vector<2x128xf32> -> vector<2x128xf32>
    %262 = arith.addf %260, %261 : vector<2x128xf32>
    %263 = arith.negf %262 : vector<2x128xf32>
    %264 = math.exp %263 : vector<2x128xf32>
    %cst_56 = arith.constant 1.000000e+00 : f32
    %265 = vector.broadcast %cst_56 : f32 to vector<2x128xf32>
    %266 = arith.addf %265, %264 : vector<2x128xf32>
    %267 = arith.divf %265, %266 : vector<2x128xf32>
    %268 = math.tanh %262 : vector<2x128xf32>
    %269 = vector.extract_strided_slice %267 {offsets = [0, 0], sizes = [2, 32], strides = [1, 1]} : vector<2x128xf32> to vector<2x32xf32>
    %270 = vector.extract_strided_slice %267 {offsets = [0, 32], sizes = [2, 32], strides = [1, 1]} : vector<2x128xf32> to vector<2x32xf32>
    %271 = vector.extract_strided_slice %268 {offsets = [0, 64], sizes = [2, 32], strides = [1, 1]} : vector<2x128xf32> to vector<2x32xf32>
    %272 = vector.extract_strided_slice %267 {offsets = [0, 96], sizes = [2, 32], strides = [1, 1]} : vector<2x128xf32> to vector<2x32xf32>
    %273 = arith.mulf %270, %257 : vector<2x32xf32>
    %274 = arith.mulf %269, %271 : vector<2x32xf32>
    %275 = arith.addf %273, %274 : vector<2x32xf32>
    %276 = math.tanh %275 : vector<2x32xf32>
    %277 = arith.mulf %272, %276 : vector<2x32xf32>
    %278 = vector.extract_strided_slice %166 {offsets = [12, 0], sizes = [2, 128], strides = [1, 1]} : vector<16x128xf32> to vector<2x128xf32>
    %cst_57 = arith.constant dense<0.000000e+00> : vector<2x128xf32>
    %279 = tpu.matmul %277, %167, %cst_57 {dimension_numbers = #tpu.dot_dimension_numbers<[1], [0], [0], [1], [0, 0, 1, 1], [], []>} : vector<2x32xf32>, vector<32x128xf32>, vector<2x128xf32> -> vector<2x128xf32>
    %280 = arith.addf %278, %279 : vector<2x128xf32>
    %281 = arith.negf %280 : vector<2x128xf32>
    %282 = math.exp %281 : vector<2x128xf32>
    %cst_58 = arith.constant 1.000000e+00 : f32
    %283 = vector.broadcast %cst_58 : f32 to vector<2x128xf32>
    %284 = arith.addf %283, %282 : vector<2x128xf32>
    %285 = arith.divf %283, %284 : vector<2x128xf32>
    %286 = math.tanh %280 : vector<2x128xf32>
    %287 = vector.extract_strided_slice %285 {offsets = [0, 0], sizes = [2, 32], strides = [1, 1]} : vector<2x128xf32> to vector<2x32xf32>
    %288 = vector.extract_strided_slice %285 {offsets = [0, 32], sizes = [2, 32], strides = [1, 1]} : vector<2x128xf32> to vector<2x32xf32>
    %289 = vector.extract_strided_slice %286 {offsets = [0, 64], sizes = [2, 32], strides = [1, 1]} : vector<2x128xf32> to vector<2x32xf32>
    %290 = vector.extract_strided_slice %285 {offsets = [0, 96], sizes = [2, 32], strides = [1, 1]} : vector<2x128xf32> to vector<2x32xf32>
    %291 = arith.mulf %288, %275 : vector<2x32xf32>
    %292 = arith.mulf %287, %289 : vector<2x32xf32>
    %293 = arith.addf %291, %292 : vector<2x32xf32>
    %294 = math.tanh %293 : vector<2x32xf32>
    %295 = arith.mulf %290, %294 : vector<2x32xf32>
    %296 = vector.extract_strided_slice %166 {offsets = [14, 0], sizes = [2, 128], strides = [1, 1]} : vector<16x128xf32> to vector<2x128xf32>
    %cst_59 = arith.constant dense<0.000000e+00> : vector<2x128xf32>
    %297 = tpu.matmul %295, %167, %cst_59 {dimension_numbers = #tpu.dot_dimension_numbers<[1], [0], [0], [1], [0, 0, 1, 1], [], []>} : vector<2x32xf32>, vector<32x128xf32>, vector<2x128xf32> -> vector<2x128xf32>
    %298 = arith.addf %296, %297 : vector<2x128xf32>
    %299 = arith.negf %298 : vector<2x128xf32>
    %300 = math.exp %299 : vector<2x128xf32>
    %cst_60 = arith.constant 1.000000e+00 : f32
    %301 = vector.broadcast %cst_60 : f32 to vector<2x128xf32>
    %302 = arith.addf %301, %300 : vector<2x128xf32>
    %303 = arith.divf %301, %302 : vector<2x128xf32>
    %304 = math.tanh %298 : vector<2x128xf32>
    %305 = vector.extract_strided_slice %303 {offsets = [0, 0], sizes = [2, 32], strides = [1, 1]} : vector<2x128xf32> to vector<2x32xf32>
    %306 = vector.extract_strided_slice %303 {offsets = [0, 32], sizes = [2, 32], strides = [1, 1]} : vector<2x128xf32> to vector<2x32xf32>
    %307 = vector.extract_strided_slice %304 {offsets = [0, 64], sizes = [2, 32], strides = [1, 1]} : vector<2x128xf32> to vector<2x32xf32>
    %308 = vector.extract_strided_slice %303 {offsets = [0, 96], sizes = [2, 32], strides = [1, 1]} : vector<2x128xf32> to vector<2x32xf32>
    %309 = arith.mulf %306, %293 : vector<2x32xf32>
    %310 = arith.mulf %305, %307 : vector<2x32xf32>
    %311 = arith.addf %309, %310 : vector<2x32xf32>
    %312 = math.tanh %311 : vector<2x32xf32>
    %313 = arith.mulf %308, %312 : vector<2x32xf32>
    %c0_61 = arith.constant 0 : index
    %c0_62 = arith.constant 0 : index
    %314 = vector.load %arg7[%c0_61, %c0_62] : memref<32x10xf32, #tpu.memory_space<vmem>>, vector<32x10xf32>
    %cst_63 = arith.constant dense<0.000000e+00> : vector<2x10xf32>
    %315 = tpu.matmul %313, %314, %cst_63 {dimension_numbers = #tpu.dot_dimension_numbers<[1], [0], [0], [1], [0, 0, 1, 1], [], []>} : vector<2x32xf32>, vector<32x10xf32>, vector<2x10xf32> -> vector<2x10xf32>
    %c0_64 = arith.constant 0 : index
    %c0_65 = arith.constant 0 : index
    %316 = vector.load %arg8[%c0_64, %c0_65] : memref<1x10xf32, #tpu.memory_space<vmem>>, vector<1x10xf32>
    %317 = vector.broadcast %316 : vector<1x10xf32> to vector<2x10xf32>
    %318 = arith.addf %315, %317 : vector<2x10xf32>
    %c0_66 = arith.constant 0 : index
    %c0_67 = arith.constant 0 : index
    %319 = vector.load %arg9[%c0_66, %c0_67] : memref<2x10xf32, #tpu.memory_space<vmem>>, vector<2x10xf32>
    tpu.vector_store %arg9[%c0_66, %c0_67], %318 {strides = array<i32>} : memref<2x10xf32, #tpu.memory_space<vmem>>, vector<2x10xf32>,
    return
  }
}

</mosaic_0001>

<bundles_post_ra>
// kernel: tpu_custom_call.1
= control target key start
LH: loop header
LB: loop body
LE: loop exit
PB: predicated region body
PF: predicated region fallthrough
CT: control target
= control target key end

     0   :  { %14 = vsyncpa [#allocation4], 0  ;;  %s3190_s0 = inlined_call_operand.hbm [shape: f32[16,16], index: 0, kind: input, shape index: {}]   ;;  %s3191_s1 = inlined_call_operand.hbm [shape: f32[16,128], index: 1, kind: input, shape index: {}]   ;;  %s3192_s2 = inlined_call_operand.vmem [shape: f32[32,128], index: 2, kind: input, shape index: {}]   ;;  %s3193_s3 = inlined_call_operand.vmem [shape: f32[1,128], index: 3, kind: input, shape index: {}]   ;;  %s3194_s4 = inlined_call_operand.hbm [shape: f32[32,128], index: 4, kind: input, shape index: {}]   ;;  %s3195_s5 = inlined_call_operand.vmem [shape: f32[32,128], index: 5, kind: input, shape index: {}]   ;;  %s3196_s6 = inlined_call_operand.vmem [shape: f32[1,128], index: 6, kind: input, shape index: {}]   ;;  %s3197_s7 = inlined_call_operand.vmem [shape: f32[32,10], index: 7, kind: input, shape index: {}]   ;;  %s3198_s8 = inlined_call_operand.vmem [shape: f32[1,10], index: 8, kind: input, shape index: {}]   ;;  %s3199_s9 = inlined_call_operand.hbm [shape: f32[2,10], index: 9, kind: output, shape index: {}]  }
   0x1   :  { %15 = vsyncpa [#allocation7], 0 }
   0x2   :  { %16 = vsyncpa [#allocation5], 0  ;;  %s2774_s30 = smov [#allocation6]   ;;  %s2775_s11 = smov [#allocation3]  }
   0x3   :  { %s34_s10 = sshll.u32 %s2774_s30, 4  ;;  %s22_s12 = sshll.u32 %s2775_s11, 4  ;;  %s35_s10 = int_to_ptr.vmem [resolvable:$true] %s34_s10  ;;  %s2835_s12 = int_to_ptr.vmem [resolvable:$true] %s22_s12 }
   0x4   :  { %s2680_s15 = scalar_lea.hbm %s3191_s1, 256 }
   0x5   :  { %p2681_p0 = scmp.ne.s32.totalorder %s3191_s1, %s2680_s15  ;;  %p2684_p1 = scmp.lt.u32.totalorder %s2680_s15, %s3191_s1 }
   0x7   :  { %p2686_p2 = pnand %p2684_p1, %p2681_p0 }
   0x9   :  { %2689 = shalt.err (!%p2686_p2)
}
   0xa   :  { %s2690_s20 = scalar_lea.vmem %s35_s10, 256  ;;  %p2695_p4 = scmp.lt.s32.totalorder %s35_s10, %s35_s10 }
   0xb   :  { %p2691_p3 = scmp.ne.s32.totalorder %s35_s10, %s2690_s20  ;;  %p2696_p5 = scmp.lt.s32.totalorder %s2690_s20, %s2690_s20 }
   0xd   :  { %p2697_p6 = por %p2696_p5, %p2695_p4 }
   0xf   :  { %p2698_p7 = pnand %p2697_p6, %p2691_p3 }
  0x11   :  { %2701 = shalt.err (!%p2698_p7)
}
  0x12   :  { %s2776_s21 = smov 128   ;;  %s2777_s22 = smov 8  }
  0x13   :  { %40 = dma.hbm_to_vmem [thread:$0]  %s3191_s1, 256, %s35_s10, [#allocation7], %s2776_s21, %s2776_s21, %s2777_s22  }
  0x14   :  { %s2702_s27 = scalar_lea.hbm %s3190_s0, 256 }
  0x15   :  { %p2703_p8 = scmp.ne.s32.totalorder %s3190_s0, %s2702_s27  ;;  %p2706_p9 = scmp.lt.u32.totalorder %s2702_s27, %s3190_s0 }
  0x17   :  { %p2708_p10 = pnand %p2706_p9, %p2703_p8 }
  0x19   :  { %2711 = shalt.err (!%p2708_p10)
}
  0x1a   :  { %s2712_s13 = scalar_lea.vmem %s2835_s12, 256  ;;  %p2717_p12 = scmp.lt.s32.totalorder %s2835_s12, %s2835_s12 }
  0x1b   :  { %p2713_p11 = scmp.ne.s32.totalorder %s2835_s12, %s2712_s13  ;;  %p2718_p13 = scmp.lt.s32.totalorder %s2712_s13, %s2712_s13 }
  0x1d   :  { %p2719_p0 = por %p2718_p13, %p2717_p12 }
  0x1f   :  { %p2720_p1 = pnand %p2719_p0, %p2713_p11 }
  0x21   :  { %2723 = shalt.err (!%p2720_p1)
}
  0x22   :  { %28 = dma.hbm_to_vmem [thread:$0]  %s3190_s0, 256, %s2835_s12, [#allocation4], %s2776_s21, %s2776_s21, %s2777_s22  }
  0x23   :  { %s2778_s14 = smov [#allocation8]   ;;  %s2724_s18 = scalar_lea.hbm %s3194_s4, 512 }
  0x24   :  { %s50_s15 = sshll.u32 %s2778_s14, 4  ;;  %p2725_p2 = scmp.ne.s32.totalorder %s3194_s4, %s2724_s18  ;;  %s51_s15 = int_to_ptr.vmem [resolvable:$true] %s50_s15 }
  0x25   :  { %p2728_p3 = scmp.lt.u32.totalorder %s2724_s18, %s3194_s4 }
  0x27   :  { %p2730_p4 = pnand %p2728_p3, %p2725_p2 }
  0x29   :  { %2733 = shalt.err (!%p2730_p4)
}
  0x2a   :  { %s2734_s25 = scalar_lea.vmem %s51_s15, 512  ;;  %p2739_p6 = scmp.lt.s32.totalorder %s51_s15, %s51_s15 }
  0x2b   :  { %p2735_p5 = scmp.ne.s32.totalorder %s51_s15, %s2734_s25  ;;  %p2740_p7 = scmp.lt.s32.totalorder %s2734_s25, %s2734_s25 }
  0x2d   :  { %p2741_p8 = por %p2740_p7, %p2739_p6 }
  0x2f   :  { %p2742_p9 = pnand %p2741_p8, %p2735_p5 }
  0x31   :  { %2745 = shalt.err (!%p2742_p9)
}
  0x32   :  { %56 = dma.hbm_to_vmem [thread:$0]  %s3194_s4, 512, %s51_s15, [#allocation7], %s2776_s21, %s2776_s21, %s2777_s22  }
  0x33   :  { %2768 = dma.done.wait [#allocation4], 256  }
  0x34   :  { %2769 = vsyncadd [#allocation4], 4294967040 }
  0x35   :  { %2770 = dma.done.wait [#allocation7], 768  }
  0x36   :  { %2771 = vsyncadd [#allocation7], 4294966528  ;;  %v2779_v0 = vmov 0.0|0.0   ;;  %vm2780_vm0 = vmmov 0   ;;  %v2781_v1 = vmov 0.0   ;;  %vm85_vm1 = vcmask 130048  }
  0x37   :  { %2431 = vmatprep.subr.bf16.mxu1 %v2779_v0  ;;  %2237 = vmatprep.mubr.msk.f32.mxu1 %vm2780_vm0, %v2781_v1  ;;  %v76_v2 = vld [vmem:[#allocation6] sm:$0xff]  ;;  %v77_v3 = vld [vmem:[#allocation6 + $0x8] sm:$0xff]  ;;  %v74_v7 = vld [vmem:[#allocation3] sm:$0xff]  ;;  %s2782_s13 = smov 64   ;;  %vm274_vm2 = vcmask 254976   ;;  %vm171_vm3 = vcmask 261120  }
  0x38   :  { %v167_v4 = vld [vmem:[%s3192_s2] sm:$0xff]  ;;  %v2427_v5 = vpack.c.bf16 %v77_v3, %v76_v2  ;;  %v168_v6 = vld [vmem:[%s3192_s2 + $0x8] sm:$0xff]  ;;  %2226 = vmatprep.mubr.msk.f32.mxu0 %vm85_vm1, %v74_v7  ;;  %v169_v9 = vld [vmem:[%s3192_s2 + $0x10] sm:$0xff]  ;;  %vm383_vm4 = vcmask 257026   ;;  %vm607_vm5 = vcmask 261126   ;;  %vm495_vm6 = vcmask 259076  }
  0x39   :  { %v2896_v8 = vpack.c.bf16 %v168_v6, %v167_v4  ;;  %v170_v10 = vld [vmem:[%s3192_s2 + $0x18] sm:$0xff]  ;;  %v2089_v13 = vld [vmem:[%s3193_s3] ss:$0 sm:$0xff]  ;;  %s2783_s3 = smov 32   ;;  %vm2071_vm7 = vcmask 74752  }
  0x3a   :  { %2428 = vmatprep.subr.bf16.mxu0 %v2427_v5  ;;  %v75_v11 = vld [vmem:[#allocation3 + $0x8] sm:$0xff]  ;;  %v2906_v12 = vpack.c.bf16 %v170_v10, %v169_v9 }
  0x3b   :  { %2433 = vmatpush3.bf16.msra.mxu1 %v2896_v8  ;;  %2430 = vmatpush3.bf16.msra.mxu0 %v2427_v5 }
  0x3c   :  { %2434 = vmatprep.subr.bf16.mxu1 %v2779_v0  ;;  %2437 = vmatprep.subr.bf16.mxu0 %v2779_v0 }
  0x3e   :  { %2227 = vmatmul.mubr.msk.f32.vlgmr.msra.gmra.mrb[0].mxu0 %vm85_vm1, %v75_v11 }
  0x3f   :  { %2436 = vmatpush3.bf16.msra.mxu1 %v2906_v12  ;;  %2439 = vmatpush3.bf16.msra.mxu0 %v2896_v8 }
  0x40   :  { %2440 = vmatprep.subr.bf16.mxu0 %v2779_v0  ;;  %2248 = vmatprep.mubr.msk.f32.mxu0 %vm2780_vm0, %v2781_v1 }
  0x41   :  { %2443 = vmatprep.subr.bf16.mxu1 %v2779_v0 }
  0x42   :  { %2238 = vmatmul.mubr.f32.vlgmr.msra.gmra.mrb[0].mxu1 %v2781_v1 }
  0x43   :  { %2442 = vmatpush3.bf16.msra.mxu0 %v2906_v12  ;;  %2445 = vmatpush3.bf16.msra.mxu1 %v2896_v8 }
  0x44   :  { %2446 = vmatprep.subr.bf16.mxu1 %v2779_v0  ;;  %2259 = vmatprep.mubr.msk.f32.mxu1 %vm2780_vm0, %v2781_v1 }
  0x45   :  { %2449 = vmatprep.subr.bf16.mxu0 %v2779_v0 }
  0x47   :  { %2448 = vmatpush3.bf16.msra.mxu1 %v2906_v12 }
  0x48   :  { %2455 = vmatprep.subr.bf16.mxu1 %v2779_v0 }
 0x111   :  { %v2228_v14 = vpop.f32.mrb[0].mxu0 }
 0x112   :  { %v2929_v15 = vadd.f32 %v2228_v14, %v2089_v13  ;;  %v158_v16 = vpop.f32.mrb[1].mxu0 }
 0x113   :  { %v2931_v17 = vadd.f32 %v2089_v13, %v158_v16 }
 0x115   :  { %v241_v18 = vpop.f32.mrb[0].mxu1 }
 0x116   :  { %v245_v19 = vadd.f32 %v241_v18, %v2931_v17  ;;  %v2239_v20 = vpop.f32.mrb[1].mxu1 }
 0x118   :  { %2552 = vtanh.f32 %v245_v19  ;;  %v2092_v22 = vmul.f32 -1.442695, %v245_v19 }
 0x11a   :  { %2554 = vpow2.f32 %v2092_v22 }
 0x122   :  { %v2553_v21 = vpop.eup %2552 }
 0x123   :  { %255 = vrot.lane.b32.xlu0 %v2553_v21, %s2782_s13 }
 0x124   :  { %v2555_v23 = vpop.eup %2554 }
 0x125   :  { %v249_v24 = vadd.f32 1.0, %v2555_v23 }
 0x127   :  { %2556 = vrcp.f32 %v249_v24 }
 0x131   :  { %v2557_v25 = vpop.eup %2556 }
 0x132   :  { %v253_v28 = vmul.f32 0.0, %v2557_v25 }
 0x195   :  { %v256_v26 = vpop.permute.xlu0 %255 }
 0x196   :  { %v258_v27 = vmul.f32 %v2557_v25, %v256_v26 }
 0x198   :  { %260 = vrot.lane.b32.xlu0 %v258_v27, %s2783_s3 }
 0x20a   :  { %v261_v29 = vpop.permute.xlu0 %260 }
 0x20b   :  { %v263_v30 = vadd.f32 %v261_v29, %v253_v28 }
 0x20d   :  { %2558 = vtanh.f32 %v263_v30  ;;  %v360_v46 = vrot.slane %v263_v30, 6 }
 0x217   :  { %v2559_v31 = vpop.eup %2558 }
 0x218   :  { %266 = vrot.lane.b32.xlu1 %v2559_v31, %s2782_s13 }
 0x28a   :  { %v267_v32 = vpop.permute.xlu1 %266 }
 0x28b   :  { %v269_v33 = vmul.f32 %v2557_v25, %v267_v32 }
 0x28d   :  { %271 = vrot.lane.b32.xlu1 %v269_v33, %s2783_s3 }
 0x2ff   :  { %v272_v34 = vpop.permute.xlu1 %271 }
 0x300   :  { %275 = vst.msk [vmem:[#allocation2] sm:$0x3] %vm274_vm2, %v272_v34  ;;  %2249 = vmatmul.mubr.msk.f32.vlgmr.msra.gmra.mrb[2].mxu0 %vm171_vm3, %v272_v34 }
 0x301   :  { %2451 = vmatpush3.bf16.msra.mxu0 %v2896_v8  ;;  %2270 = vmatprep.mubr.msk.f32.mxu0 %vm2780_vm0, %v2781_v1 }
 0x302   :  { %2452 = vmatprep.subr.bf16.mxu0 %v2779_v0 }
 0x305   :  { %2454 = vmatpush3.bf16.msra.mxu0 %v2906_v12 }
 0x306   :  { %2461 = vmatprep.subr.bf16.mxu0 %v2779_v0 }
 0x3d3   :  { %v344_v35 = vpop.f32.mrb[2].mxu0 }
 0x3d4   :  { %v349_v36 = vrot.slane %v344_v35, 6  ;;  %v2250_v37 = vpop.f32.mrb[3].mxu0 }
 0x3d6   :  { %v351_v38 = vadd.f32 %v349_v36, %v2931_v17 }
 0x3d8   :  { %2560 = vtanh.f32 %v351_v38  ;;  %v2094_v40 = vmul.f32 -1.442695, %v351_v38 }
 0x3da   :  { %2562 = vpow2.f32 %v2094_v40 }
 0x3e2   :  { %v2561_v39 = vpop.eup %2560 }
 0x3e3   :  { %364 = vrot.lane.b32.xlu0 %v2561_v39, %s2782_s13 }
 0x3e4   :  { %v2563_v41 = vpop.eup %2562 }
 0x3e5   :  { %v355_v42 = vadd.f32 1.0, %v2563_v41 }
 0x3e7   :  { %2564 = vrcp.f32 %v355_v42 }
 0x3f1   :  { %v2565_v43 = vpop.eup %2564 }
 0x3f2   :  { %v362_v47 = vmul.f32 %v2565_v43, %v360_v46 }
 0x455   :  { %v365_v44 = vpop.permute.xlu0 %364 }
 0x456   :  { %v367_v45 = vmul.f32 %v2565_v43, %v365_v44 }
 0x458   :  { %369 = vrot.lane.b32.xlu1 %v367_v45, %s2783_s3 }
 0x4ca   :  { %v370_v48 = vpop.permute.xlu1 %369 }
 0x4cb   :  { %v372_v49 = vadd.f32 %v370_v48, %v362_v47 }
 0x4cd   :  { %2566 = vtanh.f32 %v372_v49  ;;  %v472_v4 = vrot.slane %v372_v49, 6 }
 0x4d7   :  { %v2567_v50 = vpop.eup %2566 }
 0x4d8   :  { %375 = vrot.lane.b32.xlu0 %v2567_v50, %s2782_s13 }
 0x54a   :  { %v376_v51 = vpop.permute.xlu0 %375 }
 0x54b   :  { %v2950_v52 = vmul.f32 %v2565_v43, %v376_v51 }
 0x54d   :  { %v385_v53 = vrot.slane %v2950_v52, 2 }
 0x54f   :  { %386 = vrot.lane.b32.xlu1 %v385_v53, %s2783_s3 }
 0x5c1   :  { %v387_v54 = vpop.permute.xlu1 %386 }
 0x5c2   :  { %2260 = vmatmul.mubr.msk.f32.vlgmr.msra.gmra.mrb[2].mxu1 %vm171_vm3, %v387_v54 }
 0x5c3   :  { %2457 = vmatpush3.bf16.msra.mxu1 %v2896_v8  ;;  %2281 = vmatprep.mubr.msk.f32.mxu1 %vm2780_vm0, %v2781_v1 }
 0x5c4   :  { %2458 = vmatprep.subr.bf16.mxu1 %v2779_v0 }
 0x5c7   :  { %2460 = vmatpush3.bf16.msra.mxu1 %v2906_v12 }
 0x5c8   :  { %2467 = vmatprep.subr.bf16.mxu1 %v2779_v0 }
 0x695   :  { %v456_v55 = vpop.f32.mrb[2].mxu1 }
 0x696   :  { %v461_v56 = vrot.slane %v456_v55, 4  ;;  %v2261_v57 = vpop.f32.mrb[3].mxu1 }
 0x698   :  { %v463_v58 = vadd.f32 %v461_v56, %v2931_v17 }
 0x69a   :  { %2568 = vtanh.f32 %v463_v58  ;;  %v2096_v60 = vmul.f32 -1.442695, %v463_v58 }
 0x69c   :  { %2570 = vpow2.f32 %v2096_v60 }
 0x6a4   :  { %v2569_v59 = vpop.eup %2568 }
 0x6a5   :  { %476 = vrot.lane.b32.xlu0 %v2569_v59, %s2782_s13 }
 0x6a6   :  { %v2571_v61 = vpop.eup %2570 }
 0x6a7   :  { %v467_v62 = vadd.f32 1.0, %v2571_v61 }
 0x6a9   :  { %2572 = vrcp.f32 %v467_v62 }
 0x6b3   :  { %v2573_v63 = vpop.eup %2572 }
 0x6b4   :  { %v474_v5 = vmul.f32 %v2573_v63, %v472_v4 }
 0x717   :  { %v477_v2 = vpop.permute.xlu0 %476 }
 0x718   :  { %v479_v3 = vmul.f32 %v2573_v63, %v477_v2 }
 0x71a   :  { %481 = vrot.lane.b32.xlu1 %v479_v3, %s2783_s3 }
 0x78c   :  { %v482_v6 = vpop.permute.xlu1 %481 }
 0x78d   :  { %v484_v7 = vadd.f32 %v482_v6, %v474_v5 }
 0x78f   :  { %2574 = vtanh.f32 %v484_v7  ;;  %v584_v28 = vrot.slane %v484_v7, 6 }
 0x799   :  { %v2575_v9 = vpop.eup %2574 }
 0x79a   :  { %487 = vrot.lane.b32.xlu0 %v2575_v9, %s2782_s13 }
 0x80c   :  { %v488_v10 = vpop.permute.xlu0 %487 }
 0x80d   :  { %v2965_v11 = vmul.f32 %v2573_v63, %v488_v10 }
 0x80f   :  { %v497_v13 = vrot.slane %v2965_v11, 4 }
 0x811   :  { %498 = vrot.lane.b32.xlu1 %v497_v13, %s2783_s3 }
 0x883   :  { %v499_v14 = vpop.permute.xlu1 %498 }
 0x884   :  { %2271 = vmatmul.mubr.msk.f32.vlgmr.msra.gmra.mrb[4].mxu0 %vm171_vm3, %v499_v14 }
 0x885   :  { %2463 = vmatpush3.bf16.msra.mxu0 %v2896_v8  ;;  %2292 = vmatprep.mubr.msk.f32.mxu0 %vm2780_vm0, %v2781_v1 }
 0x886   :  { %2464 = vmatprep.subr.bf16.mxu0 %v2779_v0 }
 0x889   :  { %2466 = vmatpush3.bf16.msra.mxu0 %v2906_v12 }
 0x88a   :  { %2473 = vmatprep.subr.bf16.mxu0 %v2779_v0 }
 0x957   :  { %v568_v16 = vpop.f32.mrb[4].mxu0 }
 0x958   :  { %v573_v18 = vrot.slane %v568_v16, 2  ;;  %v2272_v19 = vpop.f32.mrb[5].mxu0 }
 0x95a   :  { %v575_v20 = vadd.f32 %v573_v18, %v2931_v17 }
 0x95c   :  { %2576 = vtanh.f32 %v575_v20  ;;  %v2098_v22 = vmul.f32 -1.442695, %v575_v20 }
 0x95e   :  { %2578 = vpow2.f32 %v2098_v22 }
 0x966   :  { %v2577_v21 = vpop.eup %2576 }
 0x967   :  { %588 = vrot.lane.b32.xlu0 %v2577_v21, %s2782_s13 }
 0x968   :  { %v2579_v23 = vpop.eup %2578 }
 0x969   :  { %v579_v24 = vadd.f32 1.0, %v2579_v23 }
 0x96b   :  { %2580 = vrcp.f32 %v579_v24 }
 0x975   :  { %v2581_v25 = vpop.eup %2580 }
 0x976   :  { %v586_v29 = vmul.f32 %v2581_v25, %v584_v28 }
 0x9d9   :  { %v589_v26 = vpop.permute.xlu0 %588 }
 0x9da   :  { %v591_v27 = vmul.f32 %v2581_v25, %v589_v26 }
 0x9dc   :  { %593 = vrot.lane.b32.xlu1 %v591_v27, %s2783_s3 }
 0xa4e   :  { %v594_v30 = vpop.permute.xlu1 %593 }
 0xa4f   :  { %v596_v31 = vadd.f32 %v594_v30, %v586_v29 }
 0xa51   :  { %2582 = vtanh.f32 %v596_v31  ;;  %v693_v46 = vrot.slane %v596_v31, 6 }
 0xa5b   :  { %v2583_v17 = vpop.eup %2582 }
 0xa5c   :  { %599 = vrot.lane.b32.xlu0 %v2583_v17, %s2782_s13 }
 0xace   :  { %v600_v32 = vpop.permute.xlu0 %599 }
 0xacf   :  { %v2980_v33 = vmul.f32 %v2581_v25, %v600_v32 }
 0xad1   :  { %v609_v34 = vrot.slane %v2980_v33, 6 }
 0xad3   :  { %610 = vrot.lane.b32.xlu1 %v609_v34, %s2783_s3 }
 0xb45   :  { %v611_v35 = vpop.permute.xlu1 %610 }
 0xb46   :  { %2282 = vmatmul.mubr.msk.f32.vlgmr.msra.gmra.mrb[4].mxu1 %vm171_vm3, %v611_v35 }
 0xb47   :  { %2469 = vmatpush3.bf16.msra.mxu1 %v2896_v8  ;;  %2303 = vmatprep.mubr.msk.f32.mxu1 %vm2780_vm0, %v2781_v1 }
 0xb48   :  { %2470 = vmatprep.subr.bf16.mxu1 %v2779_v0 }
 0xb4b   :  { %2472 = vmatpush3.bf16.msra.mxu1 %v2906_v12 }
 0xc19   :  { %v680_v36 = vpop.f32.mrb[4].mxu1 }
 0xc1a   :  { %v684_v37 = vadd.f32 %v680_v36, %v2929_v15  ;;  %v2283_v38 = vpop.f32.mrb[5].mxu1 }
 0xc1c   :  { %2584 = vtanh.f32 %v684_v37  ;;  %v2100_v40 = vmul.f32 -1.442695, %v684_v37 }
 0xc1e   :  { %2586 = vpow2.f32 %v2100_v40 }
 0xc26   :  { %v2585_v39 = vpop.eup %2584 }
 0xc27   :  { %697 = vrot.lane.b32.xlu0 %v2585_v39, %s2782_s13 }
 0xc28   :  { %v2587_v41 = vpop.eup %2586 }
 0xc29   :  { %v688_v42 = vadd.f32 1.0, %v2587_v41 }
 0xc2b   :  { %2588 = vrcp.f32 %v688_v42 }
 0xc35   :  { %v2589_v43 = vpop.eup %2588 }
 0xc36   :  { %v695_v47 = vmul.f32 %v2589_v43, %v693_v46 }
 0xc99   :  { %v698_v44 = vpop.permute.xlu0 %697 }
 0xc9a   :  { %v700_v45 = vmul.f32 %v2589_v43, %v698_v44 }
 0xc9c   :  { %702 = vrot.lane.b32.xlu1 %v700_v45, %s2783_s3 }
 0xd0e   :  { %v703_v48 = vpop.permute.xlu1 %702 }
 0xd0f   :  { %v705_v49 = vadd.f32 %v703_v48, %v695_v47 }
 0xd11   :  { %2590 = vtanh.f32 %v705_v49 }
 0xd1b   :  { %v2591_v50 = vpop.eup %2590 }
 0xd1c   :  { %708 = vrot.lane.b32.xlu0 %v2591_v50, %s2782_s13 }
 0xd8e   :  { %v709_v51 = vpop.permute.xlu0 %708 }
 0xd8f   :  { %v711_v53 = vmul.f32 %v2589_v43, %v709_v51 }
 0xd91   :  { %713 = vrot.lane.b32.xlu1 %v711_v53, %s2783_s3 }
 0xe03   :  { %v714_v54 = vpop.permute.xlu1 %713 }
 0xe04   :  { %716 = vst.msk [vmem:[#allocation2 + $0x8] sm:$0x3] %vm274_vm2, %v714_v54  ;;  %2293 = vmatmul.mubr.msk.f32.vlgmr.msra.gmra.mrb[6].mxu0 %vm171_vm3, %v714_v54  ;;  %v1050_v54 = vld [vmem:[#allocation8 + $0x8] sm:$0xff] }
 0xe05   :  { %2475 = vmatpush3.bf16.msra.mxu0 %v2896_v8  ;;  %2314 = vmatprep.mubr.msk.f32.mxu0 %vm2780_vm0, %v2781_v1 }
 0xe06   :  { %2476 = vmatprep.subr.bf16.mxu0 %v2779_v0 }
 0xe09   :  { %2478 = vmatpush3.bf16.msra.mxu0 %v2906_v12  ;;  %v801_v12 = vrot.slane %v705_v49, 6 }
 0xe0a   :  { %2487 = vmatprep.subr.bf16.mxu0 %v2779_v0 }
 0xed7   :  { %v785_v55 = vpop.f32.mrb[6].mxu0 }
 0xed8   :  { %v790_v56 = vrot.slane %v785_v55, 6  ;;  %v2294_v57 = vpop.f32.mrb[7].mxu0 }
 0xed9   :  { %v1142_v57 = vld [vmem:[%s3195_s5 + $0x8] sm:$0xff] }
 0xeda   :  { %v792_v58 = vadd.f32 %v790_v56, %v2929_v15  ;;  %v1141_v56 = vld [vmem:[%s3195_s5] sm:$0xff] }
 0xedc   :  { %2592 = vtanh.f32 %v792_v58  ;;  %v2102_v60 = vmul.f32 -1.442695, %v792_v58  ;;  %v1051_v58 = vld [vmem:[#allocation8 + $0x10] sm:$0xff] }
 0xede   :  { %2594 = vpow2.f32 %v2102_v60  ;;  %v1143_v60 = vld [vmem:[%s3195_s5 + $0x10] sm:$0xff] }
 0xee6   :  { %v2593_v59 = vpop.eup %2592 }
 0xee7   :  { %805 = vrot.lane.b32.xlu0 %v2593_v59, %s2782_s13  ;;  %v3042_v59 = vpack.c.bf16 %v1142_v57, %v1141_v56 }
 0xee8   :  { %v2595_v8 = vpop.eup %2594 }
 0xee9   :  { %v796_v61 = vadd.f32 1.0, %v2595_v8  ;;  %v1144_v8 = vld [vmem:[%s3195_s5 + $0x18] sm:$0xff] }
 0xeeb   :  { %2596 = vrcp.f32 %v796_v61 }
 0xef5   :  { %v2597_v62 = vpop.eup %2596 }
 0xef6   :  { %v803_v3 = vmul.f32 %v2597_v62, %v801_v12 }
 0xf59   :  { %v806_v63 = vpop.permute.xlu0 %805 }
 0xf5a   :  { %v808_v2 = vmul.f32 %v2597_v62, %v806_v63 }
 0xf5c   :  { %810 = vrot.lane.b32.xlu1 %v808_v2, %s2783_s3 }
 0xfce   :  { %v811_v4 = vpop.permute.xlu1 %810 }
 0xfcf   :  { %v813_v5 = vadd.f32 %v811_v4, %v803_v3 }
 0xfd1   :  { %2598 = vtanh.f32 %v813_v5  ;;  %v912_v27 = vrot.slane %v813_v5, 6 }
 0xfdb   :  { %v2599_v6 = vpop.eup %2598 }
 0xfdc   :  { %816 = vrot.lane.b32.xlu0 %v2599_v6, %s2782_s13 }
0x104e   :  { %v817_v7 = vpop.permute.xlu0 %816 }
0x104f   :  { %v3007_v9 = vmul.f32 %v2597_v62, %v817_v7  ;;  %v3051_v62 = vpack.c.bf16 %v1144_v8, %v1143_v60 }
0x1051   :  { %v825_v10 = vrot.slane %v3007_v9, 2 }
0x1053   :  { %826 = vrot.lane.b32.xlu1 %v825_v10, %s2783_s3  ;;  %v2107_v10 = vld [vmem:[%s3196_s6] ss:$0 sm:$0xff] }
0x10c5   :  { %v827_v13 = vpop.permute.xlu1 %826 }
0x10c6   :  { %2304 = vmatmul.mubr.msk.f32.vlgmr.msra.gmra.mrb[6].mxu1 %vm171_vm3, %v827_v13 }
0x1199   :  { %v896_v14 = vpop.f32.mrb[6].mxu1 }
0x119a   :  { %v901_v16 = vrot.slane %v896_v14, 4  ;;  %v2305_v18 = vpop.f32.mrb[7].mxu1 }
0x119c   :  { %v903_v19 = vadd.f32 %v901_v16, %v2929_v15 }
0x119e   :  { %2600 = vtanh.f32 %v903_v19  ;;  %v2104_v21 = vmul.f32 -1.442695, %v903_v19 }
0x11a0   :  { %2602 = vpow2.f32 %v2104_v21 }
0x11a8   :  { %v2601_v20 = vpop.eup %2600 }
0x11a9   :  { %916 = vrot.lane.b32.xlu0 %v2601_v20, %s2782_s13 }
0x11aa   :  { %v2603_v22 = vpop.eup %2602 }
0x11ab   :  { %v907_v23 = vadd.f32 1.0, %v2603_v22 }
0x11ad   :  { %2604 = vrcp.f32 %v907_v23 }
0x11b7   :  { %v2605_v24 = vpop.eup %2604 }
0x11b8   :  { %v914_v28 = vmul.f32 %v2605_v24, %v912_v27 }
0x121b   :  { %v917_v25 = vpop.permute.xlu0 %916 }
0x121c   :  { %v919_v26 = vmul.f32 %v2605_v24, %v917_v25 }
0x121e   :  { %921 = vrot.lane.b32.xlu1 %v919_v26, %s2783_s3 }
0x1290   :  { %v922_v29 = vpop.permute.xlu1 %921 }
0x1291   :  { %v924_v30 = vadd.f32 %v922_v29, %v914_v28 }
0x1293   :  { %2606 = vtanh.f32 %v924_v30 }
0x129d   :  { %v2607_v31 = vpop.eup %2606 }
0x129e   :  { %927 = vrot.lane.b32.xlu0 %v2607_v31, %s2782_s13 }
0x1310   :  { %v928_v17 = vpop.permute.xlu0 %927 }
0x1311   :  { %v930_v32 = vmul.f32 %v2605_v24, %v928_v17 }
0x1313   :  { %v936_v34 = vrot.slane %v930_v32, 4 }
0x1315   :  { %937 = vrot.lane.b32.xlu1 %v936_v34, %s2783_s3 }
0x1387   :  { %v938_v35 = vpop.permute.xlu1 %937 }
0x1388   :  { %2315 = vmatmul.mubr.msk.f32.vlgmr.msra.gmra.mrb[8].mxu0 %vm171_vm3, %v938_v35 }
0x1389   :  { %2336 = vmatprep.mubr.msk.f32.mxu0 %vm2780_vm0, %v2781_v1  ;;  %2489 = vmatpush3.bf16.msra.mxu0 %v3042_v59 }
0x138a   :  { %2490 = vmatprep.subr.bf16.mxu0 %v2779_v0 }
0x138d   :  { %2492 = vmatpush3.bf16.msra.mxu0 %v3051_v62 }
0x138e   :  { %2499 = vmatprep.subr.bf16.mxu0 %v2779_v0 }
0x1390   :  { %2337 = vmatmul.mubr.f32.vlgmr.msra.gmra.mrb[10].mxu0 %v2781_v1 }
0x1391   :  { %2501 = vmatpush3.bf16.msra.mxu0 %v3042_v59  ;;  %2358 = vmatprep.mubr.msk.f32.mxu0 %vm2780_vm0, %v2781_v1 }
0x1392   :  { %2502 = vmatprep.subr.bf16.mxu0 %v2779_v0 }
0x1395   :  { %2504 = vmatpush3.bf16.msra.mxu0 %v3051_v62 }
0x1396   :  { %2511 = vmatprep.subr.bf16.mxu0 %v2779_v0 }
0x145b   :  { %v1007_v36 = vpop.f32.mrb[8].mxu0 }
0x145c   :  { %v1012_v37 = vrot.slane %v1007_v36, 2  ;;  %v2316_v38 = vpop.f32.mrb[9].mxu0 }
0x145e   :  { %v1014_v39 = vadd.f32 %v1012_v37, %v2929_v15  ;;  %v1023_v15 = vrot.slane %v924_v30, 6 }
0x1460   :  { %2608 = vtanh.f32 %v1014_v39  ;;  %v2106_v41 = vmul.f32 -1.442695, %v1014_v39 }
0x1462   :  { %2610 = vpow2.f32 %v2106_v41 }
0x1463   :  { %v1211_v7 = vpop.f32.mrb[10].mxu0 }
0x146a   :  { %v2609_v40 = vpop.eup %2608 }
0x146b   :  { %1027 = vrot.lane.b32.xlu0 %v2609_v40, %s2782_s13 }
0x146c   :  { %v2611_v42 = vpop.eup %2610 }
0x146d   :  { %v1018_v43 = vadd.f32 1.0, %v2611_v42 }
0x146f   :  { %2612 = vrcp.f32 %v1018_v43 }
0x1479   :  { %v2613_v44 = vpop.eup %2612 }
0x147a   :  { %v1025_v47 = vmul.f32 %v2613_v44, %v1023_v15 }
0x14dd   :  { %v1028_v45 = vpop.permute.xlu0 %1027 }
0x14de   :  { %v1030_v46 = vmul.f32 %v2613_v44, %v1028_v45 }
0x14e0   :  { %1032 = vrot.lane.b32.xlu1 %v1030_v46, %s2783_s3 }
0x14e4   :  { %380 = vrot.lane.b32.xlu1 %v2950_v52, %s2783_s3 }
0x14e8   :  { %604 = vrot.lane.b32.xlu1 %v2980_v33, %s2783_s3  ;;  %v1049_v33 = vld [vmem:[#allocation8] sm:$0xff] }
0x14e9   :  { %v2479_v55 = vpack.c.bf16 %v1050_v54, %v1049_v33 }
0x14eb   :  { %2480 = vmatprep.subr.bf16.mxu1 %v2479_v55 }
0x14ec   :  { %932 = vrot.lane.b32.xlu1 %v930_v32, %s2783_s3  ;;  %2482 = vmatpush3.bf16.msra.mxu1 %v2479_v55 }
0x1552   :  { %v1033_v48 = vpop.permute.xlu1 %1032 }
0x1553   :  { %v1035_v49 = vadd.f32 %v1033_v48, %v1025_v47 }
0x1555   :  { %2614 = vtanh.f32 %v1035_v49 }
0x1556   :  { %v381_v50 = vpop.permute.xlu1 %380 }
0x1557   :  { %384 = vst.msk [vmem:[#allocation2] sm:$0xc] %vm383_vm4, %v381_v50 }
0x155a   :  { %v605_v51 = vpop.permute.xlu1 %604 }
0x155b   :  { %608 = vst.msk [vmem:[#allocation2] sm:$0xc0] %vm607_vm5, %v605_v51 }
0x155e   :  { %v933_v52 = vpop.permute.xlu1 %932 }
0x155f   :  { %v2615_v53 = vpop.eup %2614  ;;  %935 = vst.msk [vmem:[#allocation2 + $0x8] sm:$0x30] %vm495_vm6, %v933_v52 }
0x1560   :  { %1038 = vrot.lane.b32.xlu0 %v2615_v53, %s2782_s13 }
0x1564   :  { %492 = vrot.lane.b32.xlu0 %v2965_v11, %s2783_s3  ;;  %v1052_v11 = vld [vmem:[#allocation8 + $0x18] sm:$0xff] }
0x1565   :  { %v2483_v61 = vpack.c.bf16 %v1052_v11, %v1051_v58 }
0x1567   :  { %2484 = vmatprep.subr.bf16.mxu1 %v2483_v61 }
0x1568   :  { %821 = vrot.lane.b32.xlu0 %v3007_v9, %s2783_s3  ;;  %2486 = vmatpush3.bf16.msra.mxu1 %v2483_v61  ;;  %v2338_v9 = vpop.f32.mrb[11].mxu0 }
0x1569   :  { %2493 = vmatprep.subr.bf16.mxu1 %v2779_v0 }
0x15d2   :  { %v1039_v63 = vpop.permute.xlu0 %1038 }
0x15d3   :  { %v1041_v2 = vmul.f32 %v2613_v44, %v1039_v63 }
0x15d5   :  { %1043 = vrot.lane.b32.xlu0 %v1041_v2, %s2783_s3 }
0x15d6   :  { %v493_v12 = vpop.permute.xlu0 %492 }
0x15d7   :  { %496 = vst.msk [vmem:[#allocation2] sm:$0x30] %vm495_vm6, %v493_v12 }
0x15da   :  { %v822_v3 = vpop.permute.xlu0 %821 }
0x15db   :  { %824 = vst.msk [vmem:[#allocation2 + $0x8] sm:$0xc] %vm383_vm4, %v822_v3 }
0x15de   :  { %v1047_v4 = vld [vmem:[#allocation2] sm:$0xff] }
0x15df   :  { %2325 = vmatprep.mubr.msk.f32.mxu1 %vm171_vm3, %v1047_v4 }
0x1647   :  { %v1044_v5 = vpop.permute.xlu0 %1043 }
0x1648   :  { %1046 = vst.msk [vmem:[#allocation2 + $0x8] sm:$0xc0] %vm607_vm5, %v1044_v5 }
0x164f   :  { %v1048_v6 = vld [vmem:[#allocation2 + $0x8] sm:$0xff] }
0x1650   :  { %2326 = vmatmul.mubr.msk.f32.vlgmr.msra.gmra.mrb[8].mxu1 %vm171_vm3, %v1048_v6 }
0x1651   :  { %2495 = vmatpush3.bf16.msra.mxu1 %v3042_v59  ;;  %2347 = vmatprep.mubr.msk.f32.mxu1 %vm2780_vm0, %v2781_v1 }
0x1652   :  { %2496 = vmatprep.subr.bf16.mxu1 %v2779_v0 }
0x1655   :  { %2498 = vmatpush3.bf16.msra.mxu1 %v3051_v62 }
0x1656   :  { %2505 = vmatprep.subr.bf16.mxu1 %v2779_v0 }
0x1723   :  { %v2327_v13 = vpop.f32.mrb[8].mxu1 }
0x1724   :  { %v3079_v14 = vadd.f32 %v2327_v13, %v2107_v10  ;;  %v1132_v16 = vpop.f32.mrb[9].mxu1 }
0x1725   :  { %v3081_v18 = vadd.f32 %v2107_v10, %v1132_v16 }
0x1727   :  { %v1215_v19 = vadd.f32 %v1211_v7, %v3081_v18 }
0x1729   :  { %2616 = vtanh.f32 %v1215_v19  ;;  %v2110_v21 = vmul.f32 -1.442695, %v1215_v19 }
0x172b   :  { %2618 = vpow2.f32 %v2110_v21 }
0x1733   :  { %v2617_v20 = vpop.eup %2616 }
0x1734   :  { %1225 = vrot.lane.b32.xlu1 %v2617_v20, %s2782_s13 }
0x1735   :  { %v2619_v22 = vpop.eup %2618 }
0x1736   :  { %v1219_v23 = vadd.f32 1.0, %v2619_v22 }
0x1738   :  { %2620 = vrcp.f32 %v1219_v23 }
0x1742   :  { %v2621_v24 = vpop.eup %2620 }
0x1743   :  { %v1223_v27 = vmul.f32 0.0, %v2621_v24 }
0x17a6   :  { %v1226_v25 = vpop.permute.xlu1 %1225 }
0x17a7   :  { %v1228_v26 = vmul.f32 %v2621_v24, %v1226_v25 }
0x17a9   :  { %1230 = vrot.lane.b32.xlu0 %v1228_v26, %s2783_s3 }
0x181b   :  { %v1231_v28 = vpop.permute.xlu0 %1230 }
0x181c   :  { %v1233_v29 = vadd.f32 %v1231_v28, %v1223_v27 }
0x181e   :  { %2622 = vtanh.f32 %v1233_v29  ;;  %v1327_v45 = vrot.slane %v1233_v29, 6 }
0x1828   :  { %v2623_v30 = vpop.eup %2622 }
0x1829   :  { %1236 = vrot.lane.b32.xlu1 %v2623_v30, %s2782_s13 }
0x189b   :  { %v1237_v31 = vpop.permute.xlu1 %1236 }
0x189c   :  { %v1239_v17 = vmul.f32 %v2621_v24, %v1237_v31 }
0x189e   :  { %1241 = vrot.lane.b32.xlu0 %v1239_v17, %s2783_s3 }
0x1910   :  { %v1242_v32 = vpop.permute.xlu0 %1241 }
0x1911   :  { %2348 = vmatmul.mubr.msk.f32.vlgmr.msra.gmra.mrb[10].mxu1 %vm171_vm3, %v1242_v32 }
0x1912   :  { %2507 = vmatpush3.bf16.msra.mxu1 %v3042_v59  ;;  %2369 = vmatprep.mubr.msk.f32.mxu1 %vm2780_vm0, %v2781_v1 }
0x1913   :  { %2508 = vmatprep.subr.bf16.mxu1 %v2779_v0 }
0x1916   :  { %2510 = vmatpush3.bf16.msra.mxu1 %v3051_v62 }
0x1917   :  { %2517 = vmatprep.subr.bf16.mxu1 %v2779_v0 }
0x19e4   :  { %v1311_v34 = vpop.f32.mrb[10].mxu1 }
0x19e5   :  { %v1316_v35 = vrot.slane %v1311_v34, 6  ;;  %v2349_v36 = vpop.f32.mrb[11].mxu1 }
0x19e7   :  { %v1318_v37 = vadd.f32 %v1316_v35, %v3081_v18 }
0x19e9   :  { %2624 = vtanh.f32 %v1318_v37  ;;  %v2112_v39 = vmul.f32 -1.442695, %v1318_v37 }
0x19eb   :  { %2626 = vpow2.f32 %v2112_v39 }
0x19f3   :  { %v2625_v38 = vpop.eup %2624 }
0x19f4   :  { %1331 = vrot.lane.b32.xlu1 %v2625_v38, %s2782_s13 }
0x19f5   :  { %v2627_v40 = vpop.eup %2626 }
0x19f6   :  { %v1322_v41 = vadd.f32 1.0, %v2627_v40 }
0x19f8   :  { %2628 = vrcp.f32 %v1322_v41 }
0x1a02   :  { %v2629_v42 = vpop.eup %2628 }
0x1a03   :  { %v1329_v46 = vmul.f32 %v2629_v42, %v1327_v45 }
0x1a66   :  { %v1332_v43 = vpop.permute.xlu1 %1331 }
0x1a67   :  { %v1334_v44 = vmul.f32 %v2629_v42, %v1332_v43 }
0x1a69   :  { %1336 = vrot.lane.b32.xlu0 %v1334_v44, %s2783_s3 }
0x1adb   :  { %v1337_v15 = vpop.permute.xlu0 %1336 }
0x1adc   :  { %v1339_v47 = vadd.f32 %v1337_v15, %v1329_v46 }
0x1ade   :  { %2630 = vtanh.f32 %v1339_v47  ;;  %v1434_v63 = vrot.slane %v1339_v47, 6 }
0x1ae8   :  { %v2631_v48 = vpop.eup %2630 }
0x1ae9   :  { %1342 = vrot.lane.b32.xlu1 %v2631_v48, %s2782_s13 }
0x1b5b   :  { %v1343_v49 = vpop.permute.xlu1 %1342 }
0x1b5c   :  { %v1345_v50 = vmul.f32 %v2629_v42, %v1343_v49 }
0x1b5e   :  { %v1347_v51 = vrot.slane %v1345_v50, 2 }
0x1b60   :  { %1348 = vrot.lane.b32.xlu0 %v1347_v51, %s2783_s3 }
0x1bd2   :  { %v1349_v52 = vpop.permute.xlu0 %1348 }
0x1bd3   :  { %2359 = vmatmul.mubr.msk.f32.vlgmr.msra.gmra.mrb[12].mxu0 %vm171_vm3, %v1349_v52 }
0x1bd4   :  { %2513 = vmatpush3.bf16.msra.mxu0 %v3042_v59  ;;  %2380 = vmatprep.mubr.msk.f32.mxu0 %vm2780_vm0, %v2781_v1 }
0x1bd5   :  { %2514 = vmatprep.subr.bf16.mxu0 %v2779_v0 }
0x1bd8   :  { %2516 = vmatpush3.bf16.msra.mxu0 %v3051_v62 }
0x1bd9   :  { %2523 = vmatprep.subr.bf16.mxu0 %v2779_v0 }
0x1ca6   :  { %v1418_v53 = vpop.f32.mrb[12].mxu0 }
0x1ca7   :  { %v1423_v33 = vrot.slane %v1418_v53, 4  ;;  %v2360_v54 = vpop.f32.mrb[13].mxu0 }
0x1ca9   :  { %v1425_v55 = vadd.f32 %v1423_v33, %v3081_v18 }
0x1cab   :  { %2632 = vtanh.f32 %v1425_v55  ;;  %v2114_v57 = vmul.f32 -1.442695, %v1425_v55 }
0x1cad   :  { %2634 = vpow2.f32 %v2114_v57 }
0x1cb5   :  { %v2633_v56 = vpop.eup %2632 }
0x1cb6   :  { %1438 = vrot.lane.b32.xlu1 %v2633_v56, %s2782_s13 }
0x1cb7   :  { %v2635_v58 = vpop.eup %2634 }
0x1cb8   :  { %v1429_v11 = vadd.f32 1.0, %v2635_v58 }
0x1cba   :  { %2636 = vrcp.f32 %v1429_v11 }
0x1cc4   :  { %v2637_v60 = vpop.eup %2636 }
0x1cc5   :  { %v1436_v2 = vmul.f32 %v2637_v60, %v1434_v63 }
0x1d28   :  { %v1439_v8 = vpop.permute.xlu1 %1438 }
0x1d29   :  { %v1441_v61 = vmul.f32 %v2637_v60, %v1439_v8 }
0x1d2b   :  { %1443 = vrot.lane.b32.xlu0 %v1441_v61, %s2783_s3 }
0x1d9d   :  { %v1444_v12 = vpop.permute.xlu0 %1443 }
0x1d9e   :  { %v1446_v3 = vadd.f32 %v1444_v12, %v1436_v2 }
0x1da0   :  { %2638 = vtanh.f32 %v1446_v3  ;;  %v1541_v27 = vrot.slane %v1446_v3, 6 }
0x1daa   :  { %v2639_v4 = vpop.eup %2638 }
0x1dab   :  { %1449 = vrot.lane.b32.xlu1 %v2639_v4, %s2782_s13 }
0x1e1d   :  { %v1450_v5 = vpop.permute.xlu1 %1449 }
0x1e1e   :  { %v1452_v6 = vmul.f32 %v2637_v60, %v1450_v5 }
0x1e20   :  { %v1454_v7 = vrot.slane %v1452_v6, 4 }
0x1e22   :  { %1455 = vrot.lane.b32.xlu0 %v1454_v7, %s2783_s3 }
0x1e94   :  { %v1456_v9 = vpop.permute.xlu0 %1455 }
0x1e95   :  { %2370 = vmatmul.mubr.msk.f32.vlgmr.msra.gmra.mrb[12].mxu1 %vm171_vm3, %v1456_v9 }
0x1e96   :  { %2519 = vmatpush3.bf16.msra.mxu1 %v3042_v59  ;;  %2391 = vmatprep.mubr.msk.f32.mxu1 %vm2780_vm0, %v2781_v1 }
0x1e97   :  { %2520 = vmatprep.subr.bf16.mxu1 %v2779_v0 }
0x1e9a   :  { %2522 = vmatpush3.bf16.msra.mxu1 %v3051_v62 }
0x1e9b   :  { %2529 = vmatprep.subr.bf16.mxu1 %v2779_v0 }
0x1f68   :  { %v1525_v10 = vpop.f32.mrb[12].mxu1 }
0x1f69   :  { %v1530_v13 = vrot.slane %v1525_v10, 2  ;;  %v2371_v16 = vpop.f32.mrb[13].mxu1 }
0x1f6b   :  { %v1532_v19 = vadd.f32 %v1530_v13, %v3081_v18 }
0x1f6d   :  { %2640 = vtanh.f32 %v1532_v19  ;;  %v2116_v21 = vmul.f32 -1.442695, %v1532_v19 }
0x1f6f   :  { %2642 = vpow2.f32 %v2116_v21 }
0x1f77   :  { %v2641_v20 = vpop.eup %2640 }
0x1f78   :  { %1545 = vrot.lane.b32.xlu1 %v2641_v20, %s2782_s13 }
0x1f79   :  { %v2643_v22 = vpop.eup %2642 }
0x1f7a   :  { %v1536_v23 = vadd.f32 1.0, %v2643_v22 }
0x1f7c   :  { %2644 = vrcp.f32 %v1536_v23 }
0x1f86   :  { %v2645_v24 = vpop.eup %2644 }
0x1f87   :  { %v1543_v28 = vmul.f32 %v2645_v24, %v1541_v27 }
0x1fea   :  { %v1546_v25 = vpop.permute.xlu1 %1545 }
0x1feb   :  { %v1548_v26 = vmul.f32 %v2645_v24, %v1546_v25 }
0x1fed   :  { %1550 = vrot.lane.b32.xlu0 %v1548_v26, %s2783_s3 }
0x205f   :  { %v1551_v29 = vpop.permute.xlu0 %1550 }
0x2060   :  { %v1553_v30 = vadd.f32 %v1551_v29, %v1543_v28 }
0x2062   :  { %2646 = vtanh.f32 %v1553_v30  ;;  %v1645_v45 = vrot.slane %v1553_v30, 6 }
0x206c   :  { %v2647_v18 = vpop.eup %2646 }
0x206d   :  { %1556 = vrot.lane.b32.xlu1 %v2647_v18, %s2782_s13 }
0x20df   :  { %v1557_v31 = vpop.permute.xlu1 %1556 }
0x20e0   :  { %v1559_v17 = vmul.f32 %v2645_v24, %v1557_v31 }
0x20e2   :  { %v1561_v32 = vrot.slane %v1559_v17, 6 }
0x20e4   :  { %1562 = vrot.lane.b32.xlu0 %v1561_v32, %s2783_s3 }
0x2156   :  { %v1563_v34 = vpop.permute.xlu0 %1562 }
0x2157   :  { %2381 = vmatmul.mubr.msk.f32.vlgmr.msra.gmra.mrb[14].mxu0 %vm171_vm3, %v1563_v34 }
0x2158   :  { %2525 = vmatpush3.bf16.msra.mxu0 %v3042_v59  ;;  %2402 = vmatprep.mubr.msk.f32.mxu0 %vm2780_vm0, %v2781_v1 }
0x2159   :  { %2526 = vmatprep.subr.bf16.mxu0 %v2779_v0 }
0x215c   :  { %2528 = vmatpush3.bf16.msra.mxu0 %v3051_v62 }
0x215d   :  { %2535 = vmatprep.subr.bf16.mxu0 %v2779_v0 }
0x222a   :  { %v1632_v35 = vpop.f32.mrb[14].mxu0 }
0x222b   :  { %v1636_v36 = vadd.f32 %v1632_v35, %v3079_v14  ;;  %v2382_v37 = vpop.f32.mrb[15].mxu0 }
0x222d   :  { %2648 = vtanh.f32 %v1636_v36  ;;  %v2118_v39 = vmul.f32 -1.442695, %v1636_v36 }
0x222f   :  { %2650 = vpow2.f32 %v2118_v39 }
0x2237   :  { %v2649_v38 = vpop.eup %2648 }
0x2238   :  { %1649 = vrot.lane.b32.xlu1 %v2649_v38, %s2782_s13 }
0x2239   :  { %v2651_v40 = vpop.eup %2650 }
0x223a   :  { %v1640_v41 = vadd.f32 1.0, %v2651_v40 }
0x223c   :  { %2652 = vrcp.f32 %v1640_v41 }
0x2246   :  { %v2653_v42 = vpop.eup %2652 }
0x2247   :  { %v1647_v46 = vmul.f32 %v2653_v42, %v1645_v45 }
0x22aa   :  { %v1650_v43 = vpop.permute.xlu1 %1649 }
0x22ab   :  { %v1652_v44 = vmul.f32 %v2653_v42, %v1650_v43 }
0x22ad   :  { %1654 = vrot.lane.b32.xlu0 %v1652_v44, %s2783_s3 }
0x231f   :  { %v1655_v15 = vpop.permute.xlu0 %1654 }
0x2320   :  { %v1657_v47 = vadd.f32 %v1655_v15, %v1647_v46  ;;  %v1985_v46 = vld [vmem:[%s3197_s7 + $0x8] sm:$0xff]  ;;  %v1986_v15 = vld [vmem:[%s3197_s7 + $0x10] sm:$0xff] }
0x2322   :  { %2654 = vtanh.f32 %v1657_v47 }
0x232c   :  { %v2655_v48 = vpop.eup %2654 }
0x232d   :  { %1660 = vrot.lane.b32.xlu1 %v2655_v48, %s2782_s13  ;;  %v1987_v48 = vld [vmem:[%s3197_s7 + $0x18] sm:$0xff] }
0x239f   :  { %v1661_v49 = vpop.permute.xlu1 %1660 }
0x23a0   :  { %v1663_v50 = vmul.f32 %v2653_v42, %v1661_v49  ;;  %v2539_v49 = vpack.c.bf16 %v1987_v48, %v1986_v15 }
0x23a2   :  { %1665 = vrot.lane.b32.xlu0 %v1663_v50, %s2783_s3 }
0x2414   :  { %v1666_v51 = vpop.permute.xlu0 %1665 }
0x2415   :  { %2392 = vmatmul.mubr.msk.f32.vlgmr.msra.gmra.mrb[14].mxu1 %vm171_vm3, %v1666_v51 }
0x2416   :  { %2531 = vmatpush3.bf16.msra.mxu1 %v3042_v59  ;;  %2413 = vmatprep.mubr.msk.f32.mxu1 %vm2780_vm0, %v2781_v1 }
0x2417   :  { %2532 = vmatprep.subr.bf16.mxu1 %v2779_v0 }
0x241a   :  { %2534 = vmatpush3.bf16.msra.mxu1 %v3051_v62  ;;  %v1751_v62 = vrot.slane %v1657_v47, 6 }
0x24e8   :  { %v1735_v52 = vpop.f32.mrb[14].mxu1 }
0x24e9   :  { %v1740_v53 = vrot.slane %v1735_v52, 6  ;;  %v2393_v33 = vpop.f32.mrb[15].mxu1 }
0x24eb   :  { %v1742_v54 = vadd.f32 %v1740_v53, %v3079_v14 }
0x24ed   :  { %2656 = vtanh.f32 %v1742_v54  ;;  %v2120_v56 = vmul.f32 -1.442695, %v1742_v54  ;;  %v2125_v54 = vld [vmem:[%s3198_s8] ss:$0 sm:$0xff] }
0x24ef   :  { %2658 = vpow2.f32 %v2120_v56 }
0x24f7   :  { %v2657_v55 = vpop.eup %2656 }
0x24f8   :  { %1755 = vrot.lane.b32.xlu1 %v2657_v55, %s2782_s13 }
0x24f9   :  { %v2659_v57 = vpop.eup %2658 }
0x24fa   :  { %v1746_v59 = vadd.f32 1.0, %v2659_v57 }
0x24fc   :  { %2660 = vrcp.f32 %v1746_v59 }
0x2506   :  { %v2661_v58 = vpop.eup %2660 }
0x2507   :  { %v1753_v8 = vmul.f32 %v2661_v58, %v1751_v62 }
0x256a   :  { %v1756_v11 = vpop.permute.xlu1 %1755 }
0x256b   :  { %v1758_v60 = vmul.f32 %v2661_v58, %v1756_v11 }
0x256d   :  { %1760 = vrot.lane.b32.xlu0 %v1758_v60, %s2783_s3 }
0x25df   :  { %v1761_v61 = vpop.permute.xlu0 %1760 }
0x25e0   :  { %v1763_v63 = vadd.f32 %v1761_v61, %v1753_v8 }
0x25e2   :  { %2662 = vtanh.f32 %v1763_v63 }
0x25ec   :  { %v2663_v2 = vpop.eup %2662 }
0x25ed   :  { %1766 = vrot.lane.b32.xlu1 %v2663_v2, %s2782_s13 }
0x265f   :  { %v1767_v12 = vpop.permute.xlu1 %1766 }
0x2660   :  { %v1769_v3 = vmul.f32 %v2661_v58, %v1767_v12 }
0x2662   :  { %v1771_v4 = vrot.slane %v1769_v3, 2 }
0x2664   :  { %1772 = vrot.lane.b32.xlu0 %v1771_v4, %s2783_s3 }
0x26d6   :  { %v1773_v5 = vpop.permute.xlu0 %1772 }
0x26d7   :  { %2403 = vmatmul.mubr.msk.f32.vlgmr.msra.gmra.mrb[16].mxu0 %vm171_vm3, %v1773_v5 }
0x26d8   :  { %2424 = vmatprep.mubr.msk.f32.mxu0 %vm2780_vm0, %v2781_v1  ;;  %v1858_v1 = vrot.slane %v1763_v63, 6 }
0x27aa   :  { %v1842_v6 = vpop.f32.mrb[16].mxu0 }
0x27ab   :  { %v1847_v7 = vrot.slane %v1842_v6, 4  ;;  %v2404_v9 = vpop.f32.mrb[17].mxu0 }
0x27ad   :  { %v1849_v10 = vadd.f32 %v1847_v7, %v3079_v14 }
0x27af   :  { %2664 = vtanh.f32 %v1849_v10  ;;  %v2122_v16 = vmul.f32 -1.442695, %v1849_v10 }
0x27b1   :  { %2666 = vpow2.f32 %v2122_v16 }
0x27b9   :  { %v2665_v13 = vpop.eup %2664 }
0x27ba   :  { %1862 = vrot.lane.b32.xlu1 %v2665_v13, %s2782_s13 }
0x27bb   :  { %v2667_v19 = vpop.eup %2666 }
0x27bc   :  { %v1853_v20 = vadd.f32 1.0, %v2667_v19 }
0x27be   :  { %2668 = vrcp.f32 %v1853_v20 }
0x27c8   :  { %v2669_v21 = vpop.eup %2668 }
0x27c9   :  { %v1860_v24 = vmul.f32 %v2669_v21, %v1858_v1 }
0x282c   :  { %v1863_v22 = vpop.permute.xlu1 %1862 }
0x282d   :  { %v1865_v23 = vmul.f32 %v2669_v21, %v1863_v22 }
0x282f   :  { %1867 = vrot.lane.b32.xlu0 %v1865_v23, %s2783_s3 }
0x28a1   :  { %v1868_v25 = vpop.permute.xlu0 %1867 }
0x28a2   :  { %v1870_v26 = vadd.f32 %v1868_v25, %v1860_v24 }
0x28a4   :  { %2670 = vtanh.f32 %v1870_v26  ;;  %v1965_v42 = vrot.slane %v1870_v26, 6 }
0x28ae   :  { %v2671_v27 = vpop.eup %2670 }
0x28af   :  { %1873 = vrot.lane.b32.xlu1 %v2671_v27, %s2782_s13 }
0x2921   :  { %v1874_v28 = vpop.permute.xlu1 %1873 }
0x2922   :  { %v1876_v29 = vmul.f32 %v2669_v21, %v1874_v28 }
0x2924   :  { %v1878_v30 = vrot.slane %v1876_v29, 4 }
0x2926   :  { %1879 = vrot.lane.b32.xlu0 %v1878_v30, %s2783_s3 }
0x2998   :  { %v1880_v18 = vpop.permute.xlu0 %1879 }
0x2999   :  { %2414 = vmatmul.mubr.msk.f32.vlgmr.msra.gmra.mrb[16].mxu1 %vm171_vm3, %v1880_v18 }
0x2a6c   :  { %v1949_v31 = vpop.f32.mrb[16].mxu1 }
0x2a6d   :  { %v1954_v17 = vrot.slane %v1949_v31, 2  ;;  %v2415_v32 = vpop.f32.mrb[17].mxu1 }
0x2a6f   :  { %v1956_v34 = vadd.f32 %v1954_v17, %v3079_v14  ;;  %v1984_v14 = vld [vmem:[%s3197_s7] sm:$0xff]  ;;  %s2784_s7 = smov [#allocation9]  }
0x2a70   :  { %v2536_v47 = vpack.c.bf16 %v1985_v46, %v1984_v14  ;;  %s2079_s22 = sshll.u32 %s2784_s7, 4  ;;  %s2080_s22 = int_to_ptr.vmem [resolvable:$true] %s2079_s22 }
0x2a71   :  { %2672 = vtanh.f32 %v1956_v34  ;;  %v2124_v36 = vmul.f32 -1.442695, %v1956_v34  ;;  %s2746_s28 = scalar_lea.vmem %s2080_s22, 32  ;;  %p2751_p11 = scmp.lt.s32.totalorder %s2080_s22, %s2080_s22 }
0x2a72   :  { %2537 = vmatpush3.bf16.msra.mxu0 %v2536_v47  ;;  %p2747_p10 = scmp.ne.s32.totalorder %s2080_s22, %s2746_s28  ;;  %p2752_p12 = scmp.lt.s32.totalorder %s2746_s28, %s2746_s28 }
0x2a73   :  { %2674 = vpow2.f32 %v2124_v36  ;;  %2538 = vmatprep.subr.bf16.mxu0 %v2779_v0 }
0x2a74   :  { %p2753_p13 = por %p2752_p12, %p2751_p11 }
0x2a76   :  { %2540 = vmatpush3.bf16.msra.mxu0 %v2539_v49  ;;  %p2754_p0 = pnand %p2753_p13, %p2747_p10 }
0x2a7b   :  { %v2673_v35 = vpop.eup %2672 }
0x2a7c   :  { %1969 = vrot.lane.b32.xlu1 %v2673_v35, %s2782_s13 }
0x2a7d   :  { %v2675_v37 = vpop.eup %2674 }
0x2a7e   :  { %v1960_v38 = vadd.f32 1.0, %v2675_v37 }
0x2a80   :  { %2676 = vrcp.f32 %v1960_v38 }
0x2a8a   :  { %v2677_v39 = vpop.eup %2676 }
0x2a8b   :  { %v1967_v43 = vmul.f32 %v2677_v39, %v1965_v42 }
0x2aee   :  { %v1970_v40 = vpop.permute.xlu1 %1969 }
0x2aef   :  { %v1972_v41 = vmul.f32 %v2677_v39, %v1970_v40 }
0x2af1   :  { %1974 = vrot.lane.b32.xlu0 %v1972_v41, %s2783_s3 }
0x2b63   :  { %v1975_v44 = vpop.permute.xlu0 %1974 }
0x2b64   :  { %v1977_v45 = vadd.f32 %v1975_v44, %v1967_v43 }
0x2b66   :  { %2678 = vtanh.f32 %v1977_v45 }
0x2b70   :  { %v2679_v50 = vpop.eup %2678 }
0x2b71   :  { %1980 = vrot.lane.b32.xlu1 %v2679_v50, %s2782_s13 }
0x2be3   :  { %v1981_v51 = vpop.permute.xlu1 %1980 }
0x2be4   :  { %v1983_v52 = vmul.f32 %v2677_v39, %v1981_v51 }
0x2be6   :  { %v1996_v53 = vrot.slane %v1983_v52, 6 }
0x2be8   :  { %1997 = vrot.lane.b32.xlu0 %v1996_v53, %s2783_s3 }
0x2c5a   :  { %v1998_v33 = vpop.permute.xlu0 %1997 }
0x2c5b   :  { %2425 = vmatmul.mubr.msk.f32.vlgmr.msra.gmra.mrb[18].mxu0 %vm171_vm3, %v1998_v33 }
0x2d2e   :  { %v2067_v55 = vpop.f32.mrb[18].mxu0 }
0x2d2f   :  { %v2068_v0 = vadd.f32 %v2125_v54, %v2067_v55  ;;  %v2426_v56 = vpop.f32.mrb[19].mxu0 }
0x2d31   :  { %2072 = vst.msk [vmem:[#allocation9] sm:$0x3] %vm2071_vm7, %v2068_v0 }
0x2d32   :  { %2757 = shalt.err (!%p2754_p0)
}
0x2d33   :  { %s2758_s2 = scalar_lea.hbm %s3199_s9, 32 }
0x2d34   :  { %p2759_p1 = scmp.ne.s32.totalorder %s3199_s9, %s2758_s2  ;;  %p2762_p2 = scmp.lt.u32.totalorder %s2758_s2, %s3199_s9 }
0x2d36   :  { %p2764_p3 = pnand %p2762_p2, %p2759_p1 }
0x2d38   :  { %2767 = shalt.err (!%p2764_p3)
}
0x2d39   :  { %2082 = dma.vmem_to_hbm [thread:$0]  %s2080_s22, 32, %s3199_s9, [#allocation5]  }
0x2d3a   :  { %2772 = dma.done.wait [#allocation5], 32  }
0x2d3b   :  { %2773 = vsyncadd [#allocation5], 4294967264 }
0x2d3c   :  { %2086 = vsyncpa [#allocation4], 1 }
0x2d3d   :  { %2087 = vsyncpa [#allocation7], 1 }
0x2d3e   :  { %2088 = vsyncpa [#allocation5], 1 }

</bundles_post_ra>
